<compile_context>
chip_gen: v6e
topology: v6e:2x2x1
jax: 0.10.0
libtpu: 0.0.40
codegen_flags: <defaults>
</compile_context>

<pallas_src>
import functools
import math

import jax
import jax.numpy as jnp
from jax.experimental import pallas as pl
from jax.experimental.pallas import tpu as pltpu

V_PAD = 128  # lane-dense output width (last dim multiple of 128)


def _vmem_spec():
    return pl.BlockSpec(memory_space=pltpu.MemorySpace.VMEM)


def _smem_spec():
    return pl.BlockSpec(memory_space=pltpu.MemorySpace.SMEM)


def _graph_layernorm(z, gamma, beta, eps):
    # torch_geometric.nn.LayerNorm(mode="graph"), single graph: normalize over
    # all nodes and all channels; affine params are per-channel.
    # Single-pass stats: sum(z) and sum(z*z) have no data dependency between
    # them; var = E[z^2] - E[z]^2 (f32, post-ReLU/matmul -> numerically fine).
    inv_n = 1.0 / float(z.size)
    mean = jnp.sum(z) * inv_n
    mean_sq = jnp.sum(z * z) * inv_n
    var = mean_sq - mean * mean
    return (z - mean) * jax.lax.rsqrt(var + eps) * gamma + beta


def fused_gin_kernel(scal_ref, t_ref, x_ref, adj_ref, twb_ref,
                     w1_0_ref, w1_r_ref, w2_ref, b1_ref, aux_ref,
                     linkw_ref, o_ref, *, num_layers, t_limit, ln_eps, v, v_pad):
    # Inputs (packed):
    #   scal_ref  (L+1,)        SMEM f32   -- [eps_0..eps_{L-1}, link_b]
    #   t_ref     (V, 1)        VMEM f32
    #   x_ref     (V, Din)      VMEM f32
    #   adj_ref   (V, V)        VMEM bf16
    #   twb_ref   (4, T)        VMEM f32   -- rows: w_sin, w_cos, w_lin, bias
    #   w1_0_ref  (Din+T, 2H)   VMEM bf16  -- layer-0 MLP first weight (full)
    #   w1_r_ref  (L-1, H, 2H)  VMEM bf16  -- layers 1..L-1 first weights
    #   w2_ref    (L, 2H, H)    VMEM bf16
    #   b1_ref    (L, 2H)       VMEM f32
    #   aux_ref   (L, 3, H)     VMEM f32   -- rows per layer: b2, gamma, beta
    #   linkw_ref (1, H)        VMEM f32
    #   o_ref     (V, V_PAD)    VMEM f32 output (all-pairs link probabilities)
    f32, bf16 = jnp.float32, jnp.bfloat16

    # ---- time embedding: Linear(3, T) over [sin, cos, lin] + swish (f32) ----
    arg = t_ref[...] * (1.0 / t_limit)                               # (V, 1)
    emb = (jnp.sin(arg * (math.pi / 2.0)) * twb_ref[0:1, :]
           + jnp.cos(arg * (math.pi / 2.0)) * twb_ref[1:2, :]
           + arg * twb_ref[2:3, :]
           + twb_ref[3:4, :])                                        # (V, T)
    te = emb * jax.nn.sigmoid(emb)                                   # swish

    adj_b = adj_ref[...]                                             # (V, V) bf16

    # ---- GIN layer 0: merged K = Din + T = 256 contraction ----
    # cat = [x | te] built once in-kernel (one XLU lane shift of te).
    cat = jnp.concatenate([x_ref[...], te], axis=1)                  # (V, Din+T) f32
    h0 = ((1.0 + scal_ref[0]) * cat                                  # eps stays f32
          + jnp.dot(adj_b, cat.astype(bf16), preferred_element_type=f32))
    z = (jnp.dot(h0.astype(bf16), w1_0_ref[...], preferred_element_type=f32)
         + b1_ref[0:1, :])
    z = jnp.maximum(z, 0.0)
    z = (jnp.dot(z.astype(bf16), w2_ref[0], preferred_element_type=f32))
    aux0 = aux_ref[0]                                                # (3, H)
    z = z + aux0[0:1, :]
    h = _graph_layernorm(z, aux0[1:2, :], aux0[2:3, :], ln_eps)      # (V, H) f32

    # ---- GIN layers 1 .. L-1 (Python-unrolled) ----
    for l in range(1, num_layers):
        agg = jnp.dot(adj_b, h.astype(bf16), preferred_element_type=f32)
        hin = (1.0 + scal_ref[l]) * h + agg
        z = (jnp.dot(hin.astype(bf16), w1_r_ref[l - 1], preferred_element_type=f32)
             + b1_ref[l:l + 1, :])
        z = jnp.maximum(z, 0.0)
        z = jnp.dot(z.astype(bf16), w2_ref[l], preferred_element_type=f32)
        auxl = aux_ref[l]                                            # (3, H)
        z = z + auxl[0:1, :]
        h = _graph_layernorm(z, auxl[1:2, :], auxl[2:3, :], ln_eps)

    # ---- all-pairs link head: sigmoid((h ⊙ w_link) @ h^T + b), lane-dense ----
    s = (h * linkw_ref[...]).astype(bf16)                            # (V, H)
    h_pad = jnp.concatenate(                                         # pad AFTER bf16 cast
        [h.astype(bf16), jnp.zeros((v_pad - v, h.shape[1]), bf16)], axis=0)
    logits = jax.lax.dot_general(
        s, h_pad, dimension_numbers=(((1,), (1,)), ((), ())),
        preferred_element_type=f32) + scal_ref[num_layers]           # (V, V_PAD)
    # NOTE: columns v..v_pad-1 hold sigmoid(link_b); the wrapper slices them off.
    o_ref[...] = jax.nn.sigmoid(logits)


# ---------------------------------------------------------------------------
# One-time parameter packing (outside the jitted forward / hot path)
# ---------------------------------------------------------------------------
def pack_params(params):
    f32, bf16 = jnp.float32, jnp.bfloat16
    g = params["gnn"]
    L = len(g)
    T = params["time_w"].shape[1]
    H = g[0]["w2"].shape[1]

    eps = jnp.concatenate([layer["eps"] for layer in g]).astype(f32)
    scalars = jnp.concatenate([eps, params["link_b"].reshape(1).astype(f32)])
    time_wb = jnp.concatenate(
        [params["time_w"], params["time_b"].reshape(1, T)], axis=0).astype(f32)
    if L > 1:
        w1_rest = jnp.stack([layer["w1"] for layer in g[1:]]).astype(bf16)
    else:
        w1_rest = jnp.zeros((1, H, 2 * H), bf16)  # unused placeholder
    return {
        "scalars": scalars,                                             # (L+1,)
        "time_wb": time_wb,                                             # (4, T)
        "w1_0": g[0]["w1"].astype(bf16),                                # (Din+T, 2H)
        "w1_rest": w1_rest,                                             # (L-1, H, 2H)
        "w2": jnp.stack([layer["w2"] for layer in g]).astype(bf16),     # (L, 2H, H)
        "b1": jnp.stack([layer["b1"] for layer in g]).astype(f32),      # (L, 2H)
        "ln_aux": jnp.stack(
            [jnp.stack([layer["b2"], layer["gamma"], layer["beta"]])
             for layer in g]).astype(f32),                              # (L, 3, H)
        "link_w": params["link_w"].reshape(1, H).astype(f32),           # (1, H)
    }


# ---------------------------------------------------------------------------
# Jitted forward: pallas_call + triangle gather, nothing else.
# ---------------------------------------------------------------------------
def graph_link_gin_forward(packed, x, adj, t, edge_src, edge_dst, *,
                           t_limit, ln_eps=1e-5):
    V = x.shape[0]
    L = packed["b1"].shape[0]
    assert V <= V_PAD
    f32, bf16 = jnp.float32, jnp.bfloat16

    smem_in = [packed["scalars"]]
    vmem_in = [
        t.reshape(V, 1).astype(f32),   # no-ops if caller already passes f32/bf16
        x.astype(f32),
        adj.astype(bf16),
        packed["time_wb"],
        packed["w1_0"],
        packed["w1_rest"],
        packed["w2"],
        packed["b1"],
        packed["ln_aux"],
        packed["link_w"],
    ]

    out = pl.pallas_call(
        functools.partial(
            fused_gin_kernel, num_layers=L, t_limit=float(t_limit),
            ln_eps=float(ln_eps), v=V, v_pad=V_PAD),
        out_shape=jax.ShapeDtypeStruct((V, V_PAD), jnp.float32),
        in_specs=[_smem_spec()] + [_vmem_spec()] * len(vmem_in),
        out_specs=_vmem_spec(),
    )(*smem_in, *vmem_in)

    probs_full = out[:, :V]                  # (V, V), symmetric link probabilities
    return probs_full[edge_src, edge_dst]    # canonical (i < j) edge ordering


# ---------------------------------------------------------------------------
# Parameter init (deterministic, synthetic)
# ---------------------------------------------------------------------------
def init_params(key, input_dim, hidden_dim, time_embed_size, num_gnn_layers):
    n_keys = 4 + 4 * num_gnn_layers          # exactly what is consumed below
    ks = iter(jax.random.split(key, n_keys))
    params = {
        "time_w": 0.3 * jax.random.normal(next(ks), (3, time_embed_size), jnp.float32),
        "time_b": 0.1 * jax.random.normal(next(ks), (time_embed_size,), jnp.float32),
        "gnn": [],
    }
    for i in range(num_gnn_layers):
        din = input_dim + time_embed_size if i == 0 else hidden_dim
        layer = {
            "eps": jnp.zeros((1,), jnp.float32),  # GINConv train_eps init = 0
            "w1": (1.0 / math.sqrt(din)) * jax.random.normal(
                next(ks), (din, hidden_dim * 2), jnp.float32),
            "b1": 0.05 * jax.random.normal(next(ks), (hidden_dim * 2,), jnp.float32),
            "w2": (1.0 / math.sqrt(hidden_dim * 2)) * jax.random.normal(
                next(ks), (hidden_dim * 2, hidden_dim), jnp.float32),
            "b2": 0.05 * jax.random.normal(next(ks), (hidden_dim,), jnp.float32),
            "gamma": jnp.ones((hidden_dim,), jnp.float32),
            "beta": jnp.zeros((hidden_dim,), jnp.float32),
        }
        params["gnn"].append(layer)
    params["link_w"] = (1.0 / math.sqrt(hidden_dim)) * jax.random.normal(
        next(ks), (hidden_dim, 1), jnp.float32)
    params["link_b"] = 0.05 * jax.random.normal(next(ks), (1,), jnp.float32)
    return params


# TODO(synk): virtual-node augmentation and multi-graph (data.batch) LayerNorm
#             statistics are not implemented; this models a single graph.
# TODO(synk): BCE loss() is a training utility, not part of the forward pass.
# TODO(synk): for throughput over many graphs/timesteps add a leading
#             "parallel" grid axis (batched adj (B,V,V), per-graph LayerNorm)
#             so v7x uses both TensorCores; single-graph latency keeps no grid.
# TODO(synk): if V grows beyond toy size, re-introduce BlockSpec tiling over
#             the dense adjacency sized against v7x's 64 MiB VMEM.

if __name__ == "__main__":
    V = 16                    # number of nodes (single graph)
    input_dim = 8
    hidden_dim = 32
    time_embed_size = 248     # input_dim + T = 256 -> MXU-aligned contraction
    num_gnn_layers = 4
    t_limit = 10.0

    key = jax.random.PRNGKey(0)
    k_param, k_x, k_adj = jax.random.split(key, 3)

    params = init_params(k_param, input_dim, hidden_dim, time_embed_size,
                         num_gnn_layers)
    packed = pack_params(params)              # one-time, outside the jit hot path

    # node features and per-node time (same time for all nodes of the graph)
    x = jax.random.normal(k_x, (V, input_dim), jnp.float32)
    t = jnp.full((V,), 3.0, jnp.float32)

    # deterministic sparse undirected adjacency, no self loops (pre-cast bf16)
    upper = jax.random.bernoulli(k_adj, p=0.3, shape=(V, V)).astype(jnp.float32)
    upper = jnp.triu(upper, k=1)
    adj = (upper + upper.T).astype(jnp.bfloat16)   # (V, V), row = target

    # canonical edge ordering: all unordered pairs (i < j)
    edge_src, edge_dst = jnp.triu_indices(V, k=1)
    E = edge_src.shape[0]                          # 120

    fwd = jax.jit(functools.partial(graph_link_gin_forward, t_limit=t_limit))
    edge_probs = fwd(packed, x, adj, t, edge_src, edge_dst)
    edge_probs = jax.block_until_ready(edge_probs)

    assert edge_probs.shape == (E,)
    assert bool(jnp.all(jnp.isfinite(edge_probs)))
    assert bool(jnp.all((edge_probs >= 0.0) & (edge_probs <= 1.0)))
    print("KERNEL_OK")
</pallas_src>

<mosaic_0001>
module attributes {stable_mosaic.version = 11 : i64} {
  func.func @fused_gin_kernel(%arg0: memref<5xf32, #tpu.memory_space<smem>>, %arg1: memref<16x1xf32, #tpu.memory_space<vmem>>, %arg2: memref<16x8xf32, #tpu.memory_space<vmem>>, %arg3: memref<16x16xbf16, #tpu.memory_space<vmem>>, %arg4: memref<4x248xf32, #tpu.memory_space<vmem>>, %arg5: memref<256x64xbf16, #tpu.memory_space<vmem>>, %arg6: memref<3x32x64xbf16, #tpu.memory_space<vmem>>, %arg7: memref<4x64x32xbf16, #tpu.memory_space<vmem>>, %arg8: memref<4x64xf32, #tpu.memory_space<vmem>>, %arg9: memref<4x3x32xf32, #tpu.memory_space<vmem>>, %arg10: memref<1x32xf32, #tpu.memory_space<vmem>>, %arg11: memref<16x128xf32, #tpu.memory_space<vmem>>) attributes {dimension_semantics = [], scalar_prefetch = 0 : i64, scratch_operands = 0 : i64, tpu.core_type = #tpu.core_type<tc>} {
    %c0 = arith.constant 0 : index
    %c0_0 = arith.constant 0 : index
    %0 = vector.load %arg1[%c0, %c0_0] : memref<16x1xf32, #tpu.memory_space<vmem>>, vector<16x1xf32>
    %cst = arith.constant 1.000000e-01 : f32
    %1 = vector.broadcast %cst : f32 to vector<16x1xf32>
    %2 = arith.mulf %0, %1 : vector<16x1xf32>
    %cst_1 = arith.constant 1.57079637 : f32
    %3 = vector.broadcast %cst_1 : f32 to vector<16x1xf32>
    %4 = arith.mulf %2, %3 : vector<16x1xf32>
    %5 = math.sin %4 : vector<16x1xf32>
    %c0_2 = arith.constant 0 : index
    %c0_3 = arith.constant 0 : index
    %6 = vector.load %arg4[%c0_2, %c0_3] : memref<4x248xf32, #tpu.memory_space<vmem>>, vector<1x248xf32>
    %7 = vector.broadcast %5 : vector<16x1xf32> to vector<16x248xf32>
    %8 = vector.broadcast %6 : vector<1x248xf32> to vector<16x248xf32>
    %9 = arith.mulf %7, %8 : vector<16x248xf32>
    %cst_4 = arith.constant 1.57079637 : f32
    %10 = vector.broadcast %cst_4 : f32 to vector<16x1xf32>
    %11 = arith.mulf %2, %10 : vector<16x1xf32>
    %12 = math.cos %11 : vector<16x1xf32>
    %c1 = arith.constant 1 : index
    %c0_5 = arith.constant 0 : index
    %13 = vector.load %arg4[%c1, %c0_5] : memref<4x248xf32, #tpu.memory_space<vmem>>, vector<1x248xf32>
    %14 = vector.broadcast %12 : vector<16x1xf32> to vector<16x248xf32>
    %15 = vector.broadcast %13 : vector<1x248xf32> to vector<16x248xf32>
    %16 = arith.mulf %14, %15 : vector<16x248xf32>
    %17 = arith.addf %9, %16 : vector<16x248xf32>
    %c2 = arith.constant 2 : index
    %c0_6 = arith.constant 0 : index
    %18 = vector.load %arg4[%c2, %c0_6] : memref<4x248xf32, #tpu.memory_space<vmem>>, vector<1x248xf32>
    %19 = vector.broadcast %2 : vector<16x1xf32> to vector<16x248xf32>
    %20 = vector.broadcast %18 : vector<1x248xf32> to vector<16x248xf32>
    %21 = arith.mulf %19, %20 : vector<16x248xf32>
    %22 = arith.addf %17, %21 : vector<16x248xf32>
    %c3 = arith.constant 3 : index
    %c0_7 = arith.constant 0 : index
    %23 = vector.load %arg4[%c3, %c0_7] : memref<4x248xf32, #tpu.memory_space<vmem>>, vector<1x248xf32>
    %24 = vector.broadcast %23 : vector<1x248xf32> to vector<16x248xf32>
    %25 = arith.addf %22, %24 : vector<16x248xf32>
    %26 = arith.negf %25 : vector<16x248xf32>
    %27 = math.exp %26 : vector<16x248xf32>
    %cst_8 = arith.constant 1.000000e+00 : f32
    %28 = vector.broadcast %cst_8 : f32 to vector<16x248xf32>
    %29 = arith.addf %28, %27 : vector<16x248xf32>
    %30 = arith.divf %28, %29 : vector<16x248xf32>
    %31 = arith.mulf %25, %30 : vector<16x248xf32>
    %c0_9 = arith.constant 0 : index
    %c0_10 = arith.constant 0 : index
    %32 = vector.load %arg3[%c0_9, %c0_10] : memref<16x16xbf16, #tpu.memory_space<vmem>>, vector<16x16xbf16>
    %c0_11 = arith.constant 0 : index
    %c0_12 = arith.constant 0 : index
    %33 = vector.load %arg2[%c0_11, %c0_12] : memref<16x8xf32, #tpu.memory_space<vmem>>, vector<16x8xf32>
    %34 = tpu.concatenate %33, %31 in 1 : vector<16x8xf32>, vector<16x248xf32> -> vector<16x256xf32>
    %c0_13 = arith.constant 0 : index
    %35 = memref.load %arg0[%c0_13] : memref<5xf32, #tpu.memory_space<smem>>
    %cst_14 = arith.constant 1.000000e+00 : f32
    %36 = arith.addf %cst_14, %35 : f32
    %37 = vector.broadcast %36 : f32 to vector<16x256xf32>
    %38 = arith.mulf %37, %34 : vector<16x256xf32>
    %39 = arith.truncf %34 : vector<16x256xf32> to vector<16x256xbf16>
    %cst_15 = arith.constant dense<0.000000e+00> : vector<16x256xf32>
    %40 = tpu.matmul %32, %39, %cst_15 {dimension_numbers = #tpu.dot_dimension_numbers<[1], [0], [0], [1], [0, 0, 1, 1], [], []>} : vector<16x16xbf16>, vector<16x256xbf16>, vector<16x256xf32> -> vector<16x256xf32>
    %41 = arith.addf %38, %40 : vector<16x256xf32>
    %42 = arith.truncf %41 : vector<16x256xf32> to vector<16x256xbf16>
    %c0_16 = arith.constant 0 : index
    %c0_17 = arith.constant 0 : index
    %43 = vector.load %arg5[%c0_16, %c0_17] : memref<256x64xbf16, #tpu.memory_space<vmem>>, vector<256x64xbf16>
    %cst_18 = arith.constant dense<0.000000e+00> : vector<16x64xf32>
    %44 = tpu.matmul %42, %43, %cst_18 {dimension_numbers = #tpu.dot_dimension_numbers<[1], [0], [0], [1], [0, 0, 1, 1], [], []>} : vector<16x256xbf16>, vector<256x64xbf16>, vector<16x64xf32> -> vector<16x64xf32>
    %c0_19 = arith.constant 0 : index
    %c0_20 = arith.constant 0 : index
    %45 = vector.load %arg8[%c0_19, %c0_20] : memref<4x64xf32, #tpu.memory_space<vmem>>, vector<1x64xf32>
    %46 = vector.broadcast %45 : vector<1x64xf32> to vector<16x64xf32>
    %47 = arith.addf %44, %46 : vector<16x64xf32>
    %cst_21 = arith.constant 0.000000e+00 : f32
    %48 = vector.broadcast %cst_21 : f32 to vector<16x64xf32>
    %49 = arith.maximumf %47, %48 : vector<16x64xf32>
    %50 = arith.truncf %49 : vector<16x64xf32> to vector<16x64xbf16>
    %c0_22 = arith.constant 0 : index
    %c0_23 = arith.constant 0 : index
    %c0_24 = arith.constant 0 : index
    %51 = vector.load %arg7[%c0_22, %c0_23, %c0_24] : memref<4x64x32xbf16, #tpu.memory_space<vmem>>, vector<1x64x32xbf16>
    %52 = vector.shape_cast %51 : vector<1x64x32xbf16> to vector<64x32xbf16>
    %cst_25 = arith.constant dense<0.000000e+00> : vector<16x32xf32>
    %53 = tpu.matmul %50, %52, %cst_25 {dimension_numbers = #tpu.dot_dimension_numbers<[1], [0], [0], [1], [0, 0, 1, 1], [], []>} : vector<16x64xbf16>, vector<64x32xbf16>, vector<16x32xf32> -> vector<16x32xf32>
    %c0_26 = arith.constant 0 : index
    %c0_27 = arith.constant 0 : index
    %c0_28 = arith.constant 0 : index
    %54 = vector.load %arg9[%c0_26, %c0_27, %c0_28] : memref<4x3x32xf32, #tpu.memory_space<vmem>>, vector<1x3x32xf32>
    %55 = vector.shape_cast %54 : vector<1x3x32xf32> to vector<3x32xf32>
    %56 = vector.extract_strided_slice %55 {offsets = [0, 0], sizes = [1, 32], strides = [1, 1]} : vector<3x32xf32> to vector<1x32xf32>
    %57 = vector.broadcast %56 : vector<1x32xf32> to vector<16x32xf32>
    %58 = arith.addf %53, %57 : vector<16x32xf32>
    %59 = vector.extract_strided_slice %55 {offsets = [1, 0], sizes = [1, 32], strides = [1, 1]} : vector<3x32xf32> to vector<1x32xf32>
    %60 = vector.extract_strided_slice %55 {offsets = [2, 0], sizes = [1, 32], strides = [1, 1]} : vector<3x32xf32> to vector<1x32xf32>
    %61 = vector.shape_cast %58 : vector<16x32xf32> to vector<1x16x32xf32>
    %cst_29 = arith.constant dense<0.000000e+00> : vector<1xf32>
    %62 = vector.multi_reduction <add>, %61, %cst_29 [1, 2] : vector<1x16x32xf32> to vector<1xf32>
    %63 = vector.shape_cast %62 : vector<1xf32> to vector<1x1x1xf32>
    %64 = vector.extract %63[0, 0, 0] : f32 from vector<1x1x1xf32>
    %cst_30 = arith.constant 0.001953125 : f32
    %65 = arith.mulf %64, %cst_30 : f32
    %66 = arith.mulf %58, %58 : vector<16x32xf32>
    %67 = vector.shape_cast %66 : vector<16x32xf32> to vector<1x16x32xf32>
    %cst_31 = arith.constant dense<0.000000e+00> : vector<1xf32>
    %68 = vector.multi_reduction <add>, %67, %cst_31 [1, 2] : vector<1x16x32xf32> to vector<1xf32>
    %69 = vector.shape_cast %68 : vector<1xf32> to vector<1x1x1xf32>
    %70 = vector.extract %69[0, 0, 0] : f32 from vector<1x1x1xf32>
    %cst_32 = arith.constant 0.001953125 : f32
    %71 = arith.mulf %70, %cst_32 : f32
    %72 = arith.mulf %65, %65 : f32
    %73 = arith.subf %71, %72 : f32
    %74 = vector.broadcast %65 : f32 to vector<16x32xf32>
    %75 = arith.subf %58, %74 : vector<16x32xf32>
    %cst_33 = arith.constant 9.99999974E-6 : f32
    %76 = arith.addf %73, %cst_33 : f32
    %77 = math.rsqrt %76 : f32
    %78 = vector.broadcast %77 : f32 to vector<16x32xf32>
    %79 = arith.mulf %75, %78 : vector<16x32xf32>
    %80 = vector.broadcast %59 : vector<1x32xf32> to vector<16x32xf32>
    %81 = arith.mulf %79, %80 : vector<16x32xf32>
    %82 = vector.broadcast %60 : vector<1x32xf32> to vector<16x32xf32>
    %83 = arith.addf %81, %82 : vector<16x32xf32>
    %84 = arith.truncf %83 : vector<16x32xf32> to vector<16x32xbf16>
    %cst_34 = arith.constant dense<0.000000e+00> : vector<16x32xf32>
    %85 = tpu.matmul %32, %84, %cst_34 {dimension_numbers = #tpu.dot_dimension_numbers<[1], [0], [0], [1], [0, 0, 1, 1], [], []>} : vector<16x16xbf16>, vector<16x32xbf16>, vector<16x32xf32> -> vector<16x32xf32>
    %c1_35 = arith.constant 1 : index
    %86 = memref.load %arg0[%c1_35] : memref<5xf32, #tpu.memory_space<smem>>
    %cst_36 = arith.constant 1.000000e+00 : f32
    %87 = arith.addf %cst_36, %86 : f32
    %88 = vector.broadcast %87 : f32 to vector<16x32xf32>
    %89 = arith.mulf %88, %83 : vector<16x32xf32>
    %90 = arith.addf %89, %85 : vector<16x32xf32>
    %91 = arith.truncf %90 : vector<16x32xf32> to vector<16x32xbf16>
    %c0_37 = arith.constant 0 : index
    %c0_38 = arith.constant 0 : index
    %c0_39 = arith.constant 0 : index
    %92 = vector.load %arg6[%c0_37, %c0_38, %c0_39] : memref<3x32x64xbf16, #tpu.memory_space<vmem>>, vector<1x32x64xbf16>
    %93 = vector.shape_cast %92 : vector<1x32x64xbf16> to vector<32x64xbf16>
    %cst_40 = arith.constant dense<0.000000e+00> : vector<16x64xf32>
    %94 = tpu.matmul %91, %93, %cst_40 {dimension_numbers = #tpu.dot_dimension_numbers<[1], [0], [0], [1], [0, 0, 1, 1], [], []>} : vector<16x32xbf16>, vector<32x64xbf16>, vector<16x64xf32> -> vector<16x64xf32>
    %c1_41 = arith.constant 1 : index
    %c0_42 = arith.constant 0 : index
    %95 = vector.load %arg8[%c1_41, %c0_42] : memref<4x64xf32, #tpu.memory_space<vmem>>, vector<1x64xf32>
    %96 = vector.broadcast %95 : vector<1x64xf32> to vector<16x64xf32>
    %97 = arith.addf %94, %96 : vector<16x64xf32>
    %cst_43 = arith.constant 0.000000e+00 : f32
    %98 = vector.broadcast %cst_43 : f32 to vector<16x64xf32>
    %99 = arith.maximumf %97, %98 : vector<16x64xf32>
    %100 = arith.truncf %99 : vector<16x64xf32> to vector<16x64xbf16>
    %c1_44 = arith.constant 1 : index
    %c0_45 = arith.constant 0 : index
    %c0_46 = arith.constant 0 : index
    %101 = vector.load %arg7[%c1_44, %c0_45, %c0_46] : memref<4x64x32xbf16, #tpu.memory_space<vmem>>, vector<1x64x32xbf16>
    %102 = vector.shape_cast %101 : vector<1x64x32xbf16> to vector<64x32xbf16>
    %cst_47 = arith.constant dense<0.000000e+00> : vector<16x32xf32>
    %103 = tpu.matmul %100, %102, %cst_47 {dimension_numbers = #tpu.dot_dimension_numbers<[1], [0], [0], [1], [0, 0, 1, 1], [], []>} : vector<16x64xbf16>, vector<64x32xbf16>, vector<16x32xf32> -> vector<16x32xf32>
    %c1_48 = arith.constant 1 : index
    %c0_49 = arith.constant 0 : index
    %c0_50 = arith.constant 0 : index
    %104 = vector.load %arg9[%c1_48, %c0_49, %c0_50] : memref<4x3x32xf32, #tpu.memory_space<vmem>>, vector<1x3x32xf32>
    %105 = vector.shape_cast %104 : vector<1x3x32xf32> to vector<3x32xf32>
    %106 = vector.extract_strided_slice %105 {offsets = [0, 0], sizes = [1, 32], strides = [1, 1]} : vector<3x32xf32> to vector<1x32xf32>
    %107 = vector.broadcast %106 : vector<1x32xf32> to vector<16x32xf32>
    %108 = arith.addf %103, %107 : vector<16x32xf32>
    %109 = vector.extract_strided_slice %105 {offsets = [1, 0], sizes = [1, 32], strides = [1, 1]} : vector<3x32xf32> to vector<1x32xf32>
    %110 = vector.extract_strided_slice %105 {offsets = [2, 0], sizes = [1, 32], strides = [1, 1]} : vector<3x32xf32> to vector<1x32xf32>
    %111 = vector.shape_cast %108 : vector<16x32xf32> to vector<1x16x32xf32>
    %cst_51 = arith.constant dense<0.000000e+00> : vector<1xf32>
    %112 = vector.multi_reduction <add>, %111, %cst_51 [1, 2] : vector<1x16x32xf32> to vector<1xf32>
    %113 = vector.shape_cast %112 : vector<1xf32> to vector<1x1x1xf32>
    %114 = vector.extract %113[0, 0, 0] : f32 from vector<1x1x1xf32>
    %cst_52 = arith.constant 0.001953125 : f32
    %115 = arith.mulf %114, %cst_52 : f32
    %116 = arith.mulf %108, %108 : vector<16x32xf32>
    %117 = vector.shape_cast %116 : vector<16x32xf32> to vector<1x16x32xf32>
    %cst_53 = arith.constant dense<0.000000e+00> : vector<1xf32>
    %118 = vector.multi_reduction <add>, %117, %cst_53 [1, 2] : vector<1x16x32xf32> to vector<1xf32>
    %119 = vector.shape_cast %118 : vector<1xf32> to vector<1x1x1xf32>
    %120 = vector.extract %119[0, 0, 0] : f32 from vector<1x1x1xf32>
    %cst_54 = arith.constant 0.001953125 : f32
    %121 = arith.mulf %120, %cst_54 : f32
    %122 = arith.mulf %115, %115 : f32
    %123 = arith.subf %121, %122 : f32
    %124 = vector.broadcast %115 : f32 to vector<16x32xf32>
    %125 = arith.subf %108, %124 : vector<16x32xf32>
    %cst_55 = arith.constant 9.99999974E-6 : f32
    %126 = arith.addf %123, %cst_55 : f32
    %127 = math.rsqrt %126 : f32
    %128 = vector.broadcast %127 : f32 to vector<16x32xf32>
    %129 = arith.mulf %125, %128 : vector<16x32xf32>
    %130 = vector.broadcast %109 : vector<1x32xf32> to vector<16x32xf32>
    %131 = arith.mulf %129, %130 : vector<16x32xf32>
    %132 = vector.broadcast %110 : vector<1x32xf32> to vector<16x32xf32>
    %133 = arith.addf %131, %132 : vector<16x32xf32>
    %134 = arith.truncf %133 : vector<16x32xf32> to vector<16x32xbf16>
    %cst_56 = arith.constant dense<0.000000e+00> : vector<16x32xf32>
    %135 = tpu.matmul %32, %134, %cst_56 {dimension_numbers = #tpu.dot_dimension_numbers<[1], [0], [0], [1], [0, 0, 1, 1], [], []>} : vector<16x16xbf16>, vector<16x32xbf16>, vector<16x32xf32> -> vector<16x32xf32>
    %c2_57 = arith.constant 2 : index
    %136 = memref.load %arg0[%c2_57] : memref<5xf32, #tpu.memory_space<smem>>
    %cst_58 = arith.constant 1.000000e+00 : f32
    %137 = arith.addf %cst_58, %136 : f32
    %138 = vector.broadcast %137 : f32 to vector<16x32xf32>
    %139 = arith.mulf %138, %133 : vector<16x32xf32>
    %140 = arith.addf %139, %135 : vector<16x32xf32>
    %141 = arith.truncf %140 : vector<16x32xf32> to vector<16x32xbf16>
    %c1_59 = arith.constant 1 : index
    %c0_60 = arith.constant 0 : index
    %c0_61 = arith.constant 0 : index
    %142 = vector.load %arg6[%c1_59, %c0_60, %c0_61] : memref<3x32x64xbf16, #tpu.memory_space<vmem>>, vector<1x32x64xbf16>
    %143 = vector.shape_cast %142 : vector<1x32x64xbf16> to vector<32x64xbf16>
    %cst_62 = arith.constant dense<0.000000e+00> : vector<16x64xf32>
    %144 = tpu.matmul %141, %143, %cst_62 {dimension_numbers = #tpu.dot_dimension_numbers<[1], [0], [0], [1], [0, 0, 1, 1], [], []>} : vector<16x32xbf16>, vector<32x64xbf16>, vector<16x64xf32> -> vector<16x64xf32>
    %c2_63 = arith.constant 2 : index
    %c0_64 = arith.constant 0 : index
    %145 = vector.load %arg8[%c2_63, %c0_64] : memref<4x64xf32, #tpu.memory_space<vmem>>, vector<1x64xf32>
    %146 = vector.broadcast %145 : vector<1x64xf32> to vector<16x64xf32>
    %147 = arith.addf %144, %146 : vector<16x64xf32>
    %cst_65 = arith.constant 0.000000e+00 : f32
    %148 = vector.broadcast %cst_65 : f32 to vector<16x64xf32>
    %149 = arith.maximumf %147, %148 : vector<16x64xf32>
    %150 = arith.truncf %149 : vector<16x64xf32> to vector<16x64xbf16>
    %c2_66 = arith.constant 2 : index
    %c0_67 = arith.constant 0 : index
    %c0_68 = arith.constant 0 : index
    %151 = vector.load %arg7[%c2_66, %c0_67, %c0_68] : memref<4x64x32xbf16, #tpu.memory_space<vmem>>, vector<1x64x32xbf16>
    %152 = vector.shape_cast %151 : vector<1x64x32xbf16> to vector<64x32xbf16>
    %cst_69 = arith.constant dense<0.000000e+00> : vector<16x32xf32>
    %153 = tpu.matmul %150, %152, %cst_69 {dimension_numbers = #tpu.dot_dimension_numbers<[1], [0], [0], [1], [0, 0, 1, 1], [], []>} : vector<16x64xbf16>, vector<64x32xbf16>, vector<16x32xf32> -> vector<16x32xf32>
    %c2_70 = arith.constant 2 : index
    %c0_71 = arith.constant 0 : index
    %c0_72 = arith.constant 0 : index
    %154 = vector.load %arg9[%c2_70, %c0_71, %c0_72] : memref<4x3x32xf32, #tpu.memory_space<vmem>>, vector<1x3x32xf32>
    %155 = vector.shape_cast %154 : vector<1x3x32xf32> to vector<3x32xf32>
    %156 = vector.extract_strided_slice %155 {offsets = [0, 0], sizes = [1, 32], strides = [1, 1]} : vector<3x32xf32> to vector<1x32xf32>
    %157 = vector.broadcast %156 : vector<1x32xf32> to vector<16x32xf32>
    %158 = arith.addf %153, %157 : vector<16x32xf32>
    %159 = vector.extract_strided_slice %155 {offsets = [1, 0], sizes = [1, 32], strides = [1, 1]} : vector<3x32xf32> to vector<1x32xf32>
    %160 = vector.extract_strided_slice %155 {offsets = [2, 0], sizes = [1, 32], strides = [1, 1]} : vector<3x32xf32> to vector<1x32xf32>
    %161 = vector.shape_cast %158 : vector<16x32xf32> to vector<1x16x32xf32>
    %cst_73 = arith.constant dense<0.000000e+00> : vector<1xf32>
    %162 = vector.multi_reduction <add>, %161, %cst_73 [1, 2] : vector<1x16x32xf32> to vector<1xf32>
    %163 = vector.shape_cast %162 : vector<1xf32> to vector<1x1x1xf32>
    %164 = vector.extract %163[0, 0, 0] : f32 from vector<1x1x1xf32>
    %cst_74 = arith.constant 0.001953125 : f32
    %165 = arith.mulf %164, %cst_74 : f32
    %166 = arith.mulf %158, %158 : vector<16x32xf32>
    %167 = vector.shape_cast %166 : vector<16x32xf32> to vector<1x16x32xf32>
    %cst_75 = arith.constant dense<0.000000e+00> : vector<1xf32>
    %168 = vector.multi_reduction <add>, %167, %cst_75 [1, 2] : vector<1x16x32xf32> to vector<1xf32>
    %169 = vector.shape_cast %168 : vector<1xf32> to vector<1x1x1xf32>
    %170 = vector.extract %169[0, 0, 0] : f32 from vector<1x1x1xf32>
    %cst_76 = arith.constant 0.001953125 : f32
    %171 = arith.mulf %170, %cst_76 : f32
    %172 = arith.mulf %165, %165 : f32
    %173 = arith.subf %171, %172 : f32
    %174 = vector.broadcast %165 : f32 to vector<16x32xf32>
    %175 = arith.subf %158, %174 : vector<16x32xf32>
    %cst_77 = arith.constant 9.99999974E-6 : f32
    %176 = arith.addf %173, %cst_77 : f32
    %177 = math.rsqrt %176 : f32
    %178 = vector.broadcast %177 : f32 to vector<16x32xf32>
    %179 = arith.mulf %175, %178 : vector<16x32xf32>
    %180 = vector.broadcast %159 : vector<1x32xf32> to vector<16x32xf32>
    %181 = arith.mulf %179, %180 : vector<16x32xf32>
    %182 = vector.broadcast %160 : vector<1x32xf32> to vector<16x32xf32>
    %183 = arith.addf %181, %182 : vector<16x32xf32>
    %184 = arith.truncf %183 : vector<16x32xf32> to vector<16x32xbf16>
    %cst_78 = arith.constant dense<0.000000e+00> : vector<16x32xf32>
    %185 = tpu.matmul %32, %184, %cst_78 {dimension_numbers = #tpu.dot_dimension_numbers<[1], [0], [0], [1], [0, 0, 1, 1], [], []>} : vector<16x16xbf16>, vector<16x32xbf16>, vector<16x32xf32> -> vector<16x32xf32>
    %c3_79 = arith.constant 3 : index
    %186 = memref.load %arg0[%c3_79] : memref<5xf32, #tpu.memory_space<smem>>
    %cst_80 = arith.constant 1.000000e+00 : f32
    %187 = arith.addf %cst_80, %186 : f32
    %188 = vector.broadcast %187 : f32 to vector<16x32xf32>
    %189 = arith.mulf %188, %183 : vector<16x32xf32>
    %190 = arith.addf %189, %185 : vector<16x32xf32>
    %191 = arith.truncf %190 : vector<16x32xf32> to vector<16x32xbf16>
    %c2_81 = arith.constant 2 : index
    %c0_82 = arith.constant 0 : index
    %c0_83 = arith.constant 0 : index
    %192 = vector.load %arg6[%c2_81, %c0_82, %c0_83] : memref<3x32x64xbf16, #tpu.memory_space<vmem>>, vector<1x32x64xbf16>
    %193 = vector.shape_cast %192 : vector<1x32x64xbf16> to vector<32x64xbf16>
    %cst_84 = arith.constant dense<0.000000e+00> : vector<16x64xf32>
    %194 = tpu.matmul %191, %193, %cst_84 {dimension_numbers = #tpu.dot_dimension_numbers<[1], [0], [0], [1], [0, 0, 1, 1], [], []>} : vector<16x32xbf16>, vector<32x64xbf16>, vector<16x64xf32> -> vector<16x64xf32>
    %c3_85 = arith.constant 3 : index
    %c0_86 = arith.constant 0 : index
    %195 = vector.load %arg8[%c3_85, %c0_86] : memref<4x64xf32, #tpu.memory_space<vmem>>, vector<1x64xf32>
    %196 = vector.broadcast %195 : vector<1x64xf32> to vector<16x64xf32>
    %197 = arith.addf %194, %196 : vector<16x64xf32>
    %cst_87 = arith.constant 0.000000e+00 : f32
    %198 = vector.broadcast %cst_87 : f32 to vector<16x64xf32>
    %199 = arith.maximumf %197, %198 : vector<16x64xf32>
    %200 = arith.truncf %199 : vector<16x64xf32> to vector<16x64xbf16>
    %c3_88 = arith.constant 3 : index
    %c0_89 = arith.constant 0 : index
    %c0_90 = arith.constant 0 : index
    %201 = vector.load %arg7[%c3_88, %c0_89, %c0_90] : memref<4x64x32xbf16, #tpu.memory_space<vmem>>, vector<1x64x32xbf16>
    %202 = vector.shape_cast %201 : vector<1x64x32xbf16> to vector<64x32xbf16>
    %cst_91 = arith.constant dense<0.000000e+00> : vector<16x32xf32>
    %203 = tpu.matmul %200, %202, %cst_91 {dimension_numbers = #tpu.dot_dimension_numbers<[1], [0], [0], [1], [0, 0, 1, 1], [], []>} : vector<16x64xbf16>, vector<64x32xbf16>, vector<16x32xf32> -> vector<16x32xf32>
    %c3_92 = arith.constant 3 : index
    %c0_93 = arith.constant 0 : index
    %c0_94 = arith.constant 0 : index
    %204 = vector.load %arg9[%c3_92, %c0_93, %c0_94] : memref<4x3x32xf32, #tpu.memory_space<vmem>>, vector<1x3x32xf32>
    %205 = vector.shape_cast %204 : vector<1x3x32xf32> to vector<3x32xf32>
    %206 = vector.extract_strided_slice %205 {offsets = [0, 0], sizes = [1, 32], strides = [1, 1]} : vector<3x32xf32> to vector<1x32xf32>
    %207 = vector.broadcast %206 : vector<1x32xf32> to vector<16x32xf32>
    %208 = arith.addf %203, %207 : vector<16x32xf32>
    %209 = vector.extract_strided_slice %205 {offsets = [1, 0], sizes = [1, 32], strides = [1, 1]} : vector<3x32xf32> to vector<1x32xf32>
    %210 = vector.extract_strided_slice %205 {offsets = [2, 0], sizes = [1, 32], strides = [1, 1]} : vector<3x32xf32> to vector<1x32xf32>
    %211 = vector.shape_cast %208 : vector<16x32xf32> to vector<1x16x32xf32>
    %cst_95 = arith.constant dense<0.000000e+00> : vector<1xf32>
    %212 = vector.multi_reduction <add>, %211, %cst_95 [1, 2] : vector<1x16x32xf32> to vector<1xf32>
    %213 = vector.shape_cast %212 : vector<1xf32> to vector<1x1x1xf32>
    %214 = vector.extract %213[0, 0, 0] : f32 from vector<1x1x1xf32>
    %cst_96 = arith.constant 0.001953125 : f32
    %215 = arith.mulf %214, %cst_96 : f32
    %216 = arith.mulf %208, %208 : vector<16x32xf32>
    %217 = vector.shape_cast %216 : vector<16x32xf32> to vector<1x16x32xf32>
    %cst_97 = arith.constant dense<0.000000e+00> : vector<1xf32>
    %218 = vector.multi_reduction <add>, %217, %cst_97 [1, 2] : vector<1x16x32xf32> to vector<1xf32>
    %219 = vector.shape_cast %218 : vector<1xf32> to vector<1x1x1xf32>
    %220 = vector.extract %219[0, 0, 0] : f32 from vector<1x1x1xf32>
    %cst_98 = arith.constant 0.001953125 : f32
    %221 = arith.mulf %220, %cst_98 : f32
    %222 = arith.mulf %215, %215 : f32
    %223 = arith.subf %221, %222 : f32
    %224 = vector.broadcast %215 : f32 to vector<16x32xf32>
    %225 = arith.subf %208, %224 : vector<16x32xf32>
    %cst_99 = arith.constant 9.99999974E-6 : f32
    %226 = arith.addf %223, %cst_99 : f32
    %227 = math.rsqrt %226 : f32
    %228 = vector.broadcast %227 : f32 to vector<16x32xf32>
    %229 = arith.mulf %225, %228 : vector<16x32xf32>
    %230 = vector.broadcast %209 : vector<1x32xf32> to vector<16x32xf32>
    %231 = arith.mulf %229, %230 : vector<16x32xf32>
    %232 = vector.broadcast %210 : vector<1x32xf32> to vector<16x32xf32>
    %233 = arith.addf %231, %232 : vector<16x32xf32>
    %c0_100 = arith.constant 0 : index
    %c0_101 = arith.constant 0 : index
    %234 = vector.load %arg10[%c0_100, %c0_101] : memref<1x32xf32, #tpu.memory_space<vmem>>, vector<1x32xf32>
    %235 = vector.broadcast %234 : vector<1x32xf32> to vector<16x32xf32>
    %236 = arith.mulf %233, %235 : vector<16x32xf32>
    %237 = arith.truncf %236 : vector<16x32xf32> to vector<16x32xbf16>
    %238 = arith.truncf %233 : vector<16x32xf32> to vector<16x32xbf16>
    %cst_102 = arith.constant 0.000000e+00 : bf16
    %239 = vector.broadcast %cst_102 : bf16 to vector<112x32xbf16>
    %240 = tpu.concatenate %238, %239 in 0 : vector<16x32xbf16>, vector<112x32xbf16> -> vector<128x32xbf16>
    %cst_103 = arith.constant dense<0.000000e+00> : vector<16x128xf32>
    %241 = tpu.matmul %237, %240, %cst_103 {dimension_numbers = #tpu.dot_dimension_numbers<[1], [1], [0], [0], [0, 0, 1, 0], [], []>} : vector<16x32xbf16>, vector<128x32xbf16>, vector<16x128xf32> -> vector<16x128xf32>
    %c4 = arith.constant 4 : index
    %242 = memref.load %arg0[%c4] : memref<5xf32, #tpu.memory_space<smem>>
    %243 = vector.broadcast %242 : f32 to vector<16x128xf32>
    %244 = arith.addf %241, %243 : vector<16x128xf32>
    %245 = arith.negf %244 : vector<16x128xf32>
    %246 = math.exp %245 : vector<16x128xf32>
    %cst_104 = arith.constant 1.000000e+00 : f32
    %247 = vector.broadcast %cst_104 : f32 to vector<16x128xf32>
    %248 = arith.addf %247, %246 : vector<16x128xf32>
    %249 = arith.divf %247, %248 : vector<16x128xf32>
    %c0_105 = arith.constant 0 : index
    %c0_106 = arith.constant 0 : index
    %250 = vector.load %arg11[%c0_105, %c0_106] : memref<16x128xf32, #tpu.memory_space<vmem>>, vector<16x128xf32>
    tpu.vector_store %arg11[%c0_105, %c0_106], %249 {strides = array<i32>} : memref<16x128xf32, #tpu.memory_space<vmem>>, vector<16x128xf32>,
    return
  }
}

</mosaic_0001>

<bundles_post_ra>
// kernel: graph_link_gin_forward.1
= control target key start
LH: loop header
LB: loop body
LE: loop exit
PB: predicated region body
PF: predicated region fallthrough
CT: control target
= control target key end

     0   :  { %16 = vsyncpa [#allocation3], 0  ;;  %s2703_s0 = inlined_call_operand.vmem [shape: f32[5], index: 0, kind: input, shape index: {}]   ;;  %s2704_s1 = inlined_call_operand.vmem [shape: f32[16,1], index: 1, kind: input, shape index: {}]   ;;  %s2705_s2 = inlined_call_operand.vmem [shape: f32[16,8], index: 2, kind: input, shape index: {}]   ;;  %s2706_s3 = inlined_call_operand.vmem [shape: bf16[16,16], index: 3, kind: input, shape index: {}]   ;;  %s2707_s4 = inlined_call_operand.vmem [shape: f32[4,248], index: 4, kind: input, shape index: {}]   ;;  %s2708_s5 = inlined_call_operand.vmem [shape: bf16[256,64], index: 5, kind: input, shape index: {}]   ;;  %s2709_s6 = inlined_call_operand.vmem [shape: bf16[3,32,64], index: 6, kind: input, shape index: {}]   ;;  %s2710_s7 = inlined_call_operand.vmem [shape: bf16[4,64,32], index: 7, kind: input, shape index: {}]   ;;  %s2711_s8 = inlined_call_operand.vmem [shape: f32[4,64], index: 8, kind: input, shape index: {}]   ;;  %s2712_s9 = inlined_call_operand.vmem [shape: f32[4,3,32], index: 9, kind: input, shape index: {}]   ;;  %s2713_s10 = inlined_call_operand.vmem [shape: f32[1,32], index: 10, kind: input, shape index: {}]   ;;  %s2714_s11 = inlined_call_operand.vmem [shape: f32[16,128], index: 11, kind: output, shape index: {}]  }
   0x1   :  { %s23_s19 = sshll.u32 %s2703_s0, 4  ;;  %s24_s19 = int_to_ptr.vmem [resolvable:$true] %s23_s19 }
   0x2   :  { %s2251_s20 = scalar_lea.vmem %s24_s19, 16  ;;  %p2256_p1 = scmp.lt.s32.totalorder %s24_s19, %s24_s19 }
   0x3   :  { %p2252_p0 = scmp.ne.s32.totalorder %s24_s19, %s2251_s20  ;;  %p2257_p2 = scmp.lt.s32.totalorder %s2251_s20, %s2251_s20 }
   0x5   :  { %p2258_p3 = por %p2257_p2, %p2256_p1 }
   0x7   :  { %p2259_p4 = pnand %p2258_p3, %p2252_p0 }
   0x9   :  { %2262 = shalt.err (!%p2259_p4)
}
   0xa   :  { %s2265_s21 = smov [#allocation2]  }
   0xb   :  { %26 = dma.vmem_to_smem %s24_s19, 16, %s2265_s21, [#allocation3]  }
   0xc   :  { %2263 = dma.done.wait [#allocation3], 16  }
   0xd   :  { %2264 = vsyncadd [#allocation3], 4294967280 }
   0xe   :  { %50 = sfence }
   0xf   :  { %v52_v0 = vld [vmem:[%s2704_s1] sm:$0xff]  ;;  %v2266_v1 = vmov 0   ;;  %v53_v3 = vld [vmem:[%s2704_s1 + $0x8] sm:$0xff]  ;;  %v2267_v26 = vmov 683565275   ;;  %s2273_s18 = smov 8  }
  0x10   :  { %2171 = vset.pattern.permute.xlu1 %v2266_v1  ;;  %2170 = vset.pattern.permute.xlu0 %v2266_v1  ;;  %v2342_v2 = vmul.f32 0.1, %v52_v0  ;;  %v2350_v5 = vmul.f32 0.1, %v53_v3  ;;  %v2268_v28 = vmov 2475754826  }
  0x11   :  { %680 = vmatprep.mubr.bf16.mxu0 %v2266_v1  ;;  %v2269_v30 = vmov 2131351028   ;;  %v2270_v32 = vmov 2102212464   ;;  %v2271_v34 = vmov 920167782  }
  0x12   :  { %v2348_v4 = vmul.f32 1.5707964, %v2342_v2  ;;  %v2355_v8 = vmul.f32 1.5707964, %v2350_v5  ;;  %v2272_v41 = vmov 1326507024  }
  0x13   :  { %s630_s25 = sld [smem:[#allocation2]] }
  0x14   :  { %v58_v6 = vand.u32 2147483647, %v2348_v4  ;;  %v61_v7 = vand.u32 2139095040, %v2348_v4  ;;  %v162_v11 = vand.u32 2147483647, %v2355_v8  ;;  %v165_v12 = vand.u32 2139095040, %v2355_v8 }
  0x15   :  { %vm60_vm14 = vcmp.lt.s32.totalorder %v2348_v4, 0  ;;  %s1900_s27 = sld [smem:[#allocation2 + $0x1]] }
  0x16   :  { %v62_v9 = vshrl.u32 %v61_v7, 23  ;;  %v65_v10 = vand.u32 8388607, %v58_v6  ;;  %v166_v15 = vshrl.u32 %v165_v12, 23  ;;  %v2363_v16 = vand.u32 8388607, %v162_v11 }
  0x17   :  { %vm59_vm15 = vcmp.le.f32.partialorder %v58_v6, 0.7853982 }
  0x18   :  { %v1852_v13 = vadd.s32 4294967169, %v62_v9  ;;  %v66_v14 = vor.u32 8388608, %v65_v10  ;;  %v1856_v18 = vadd.s32 4294967169, %v166_v15  ;;  %v170_v24 = vor.u32 8388608, %v2363_v16 }
  0x19   :  { %s631_s26 = sadd.f32 1.0, %s630_s25 }
  0x1a   :  { %v68_v17 = vadd.s32 1, %v1852_v13  ;;  %v2365_v20 = vshll.u32 %v66_v14, 8  ;;  %v172_v21 = vadd.s32 1, %v1856_v18 }
  0x1b   :  { %s1052_s28 = sadd.f32 1.0, %s1900_s27 }
  0x1c   :  { %vm69_vm0 = vcmp.gt.s32.totalorder %v68_v17, 0  ;;  %vm173_vm1 = vcmp.gt.s32.totalorder %v172_v21, 0 }
  0x1d   :  { %v70_v19 = vsel %vm69_vm0, %v68_v17, 0  ;;  %v174_v46 = vsel %vm173_vm1, %v172_v21, 0  ;;  %vm164_vm0 = vcmp.lt.s32.totalorder %v2355_v8, 0  ;;  %vm163_vm1 = vcmp.le.f32.partialorder %v162_v11, 0.7853982 }
  0x1e   :  { %v71_v22 = vshrl.u32 %v70_v19, 5  ;;  %v72_v23 = vand.u32 31, %v70_v19  ;;  %v175_v49 = vshrl.u32 %v174_v46, 5  ;;  %v176_v50 = vand.u32 31, %v174_v46 }
  0x20   :  { %v73_v25 = vsub.s32 32, %v72_v23  ;;  %v75_v27 = vshll.u32 %v2267_v26, %v72_v23  ;;  %v78_v29 = vshll.u32 %v2268_v28, %v72_v23  ;;  %v81_v31 = vshll.u32 %v2269_v30, %v72_v23 }
  0x21   :  { %v84_v33 = vshll.u32 %v2270_v32, %v72_v23  ;;  %v87_v35 = vshll.u32 %v2271_v34, %v72_v23  ;;  %vm90_vm2 = vcmp.lt.s32.totalorder %v71_v22, 1  ;;  %vm91_vm3 = vcmp.lt.s32.totalorder %v71_v22, 2 }
  0x22   :  { %v74_v36 = vshrl.u32 %v2267_v26, %v73_v25  ;;  %v76_v37 = vshrl.u32 %v2268_v28, %v73_v25  ;;  %v79_v38 = vshrl.u32 %v2269_v30, %v73_v25  ;;  %v82_v39 = vshrl.u32 %v2270_v32, %v73_v25 }
  0x23   :  { %v85_v40 = vshrl.u32 %v2271_v34, %v73_v25  ;;  %v88_v42 = vshrl.u32 %v2272_v41, %v73_v25  ;;  %vm92_vm4 = vcmp.lt.s32.totalorder %v71_v22, 3  ;;  %vm93_vm5 = vcmp.lt.s32.totalorder %v71_v22, 4 }
  0x24   :  { %v77_v43 = vor.u32 %v76_v37, %v75_v27  ;;  %v80_v44 = vor.u32 %v79_v38, %v78_v29  ;;  %v83_v45 = vor.u32 %v82_v39, %v81_v31  ;;  %v177_v58 = vsub.s32 32, %v176_v50 }
  0x25   :  { %v86_v47 = vor.u32 %v85_v40, %v84_v33  ;;  %v89_v48 = vor.u32 %v88_v42, %v87_v35  ;;  %v179_v62 = vshll.u32 %v2267_v26, %v176_v50  ;;  %v182_v14 = vshll.u32 %v2268_v28, %v176_v50 }
  0x26   :  { %v94_v51 = vsel %vm90_vm2, %v74_v36, %v77_v43  ;;  %v95_v52 = vsel %vm93_vm5, %v83_v45, 2102212464  ;;  %v98_v53 = vsel %vm90_vm2, %v77_v43, %v80_v44  ;;  %v102_v54 = vsel %vm90_vm2, %v80_v44, %v83_v45 }
  0x27   :  { %v96_v55 = vsel %vm92_vm4, %v80_v44, %v95_v52  ;;  %v99_v56 = vsel %vm93_vm5, %v86_v47, 920167782  ;;  %v103_v57 = vsel %vm93_vm5, %v89_v48, 1326507024  ;;  %v178_v3 = vshrl.u32 %v2267_v26, %v177_v58 }
  0x28   :  { %v97_v59 = vsel %vm91_vm3, %v94_v51, %v96_v55  ;;  %v100_v60 = vsel %vm92_vm4, %v83_v45, %v99_v56  ;;  %v104_v61 = vsel %vm92_vm4, %v86_v47, %v103_v57  ;;  %v180_v13 = vshrl.u32 %v2268_v28, %v177_v58 }
  0x29   :  { %v101_v63 = vsel %vm91_vm3, %v98_v53, %v100_v60  ;;  %v105_v0 = vsel %vm91_vm3, %v102_v54, %v104_v61  ;;  %v113_v1 = vmul.u32 %v2365_v20, %v97_v59  ;;  %v183_v15 = vshrl.u32 %v2269_v30, %v177_v58 }
  0x2a   :  { %v2380_v7 = vmul.u32.u64.low %v2365_v20, %v105_v0  ;;  %v2381_v9 = vmul.u32.u64.high %v2365_v20, %v105_v0, %v2380_v7  ;;  %v2384_v10 = vmul.u32.u64.low %v2365_v20, %v101_v63  ;;  %v2385_v12 = vmul.u32.u64.high %v2365_v20, %v101_v63, %v2384_v10 }
  0x2b   :  { %v185_v17 = vshll.u32 %v2269_v30, %v176_v50  ;;  %v186_v18 = vshrl.u32 %v2270_v32, %v177_v58  ;;  %v188_v19 = vshll.u32 %v2270_v32, %v176_v50  ;;  %v189_v21 = vshrl.u32 %v2271_v34, %v177_v58 }
  0x2c   :  { %v191_v22 = vshll.u32 %v2271_v34, %v176_v50  ;;  %v181_v23 = vor.u32 %v180_v13, %v179_v62  ;;  %v184_v25 = vor.u32 %v183_v15, %v182_v14  ;;  %v192_v27 = vshrl.u32 %v2272_v41, %v177_v58 }
  0x2d   :  { %vm194_vm6 = vcmp.lt.s32.totalorder %v175_v49, 1  ;;  %vm115_vm7 = vc.u32 %v2381_v9, %v2384_v10  ;;  %v116_v26 = vadd.s32 1, %v2385_v12  ;;  %v187_v29 = vor.u32 %v186_v18, %v185_v17 }
  0x2e   :  { %v210_v20 = vshll.u32 %v170_v24, 8  ;;  %v190_v31 = vor.u32 %v189_v21, %v188_v19  ;;  %v193_v28 = vor.u32 %v192_v27, %v191_v22  ;;  %vm195_vm8 = vcmp.lt.s32.totalorder %v175_v49, 2 }
  0x2f   :  { %vm196_vm9 = vcmp.lt.s32.totalorder %v175_v49, 3  ;;  %v117_v30 = vsel %vm115_vm7, %v116_v26, %v2385_v12  ;;  %vm197_vm10 = vcmp.lt.s32.totalorder %v175_v49, 4  ;;  %v198_v32 = vsel %vm194_vm6, %v178_v3, %v181_v23 }
  0x30   :  { %v202_v33 = vsel %vm194_vm6, %v181_v23, %v184_v25  ;;  %v118_v34 = vadd.s32 %v117_v30, %v113_v1  ;;  %v199_v35 = vsel %vm197_vm10, %v187_v29, 2102212464  ;;  %v203_v36 = vsel %vm197_vm10, %v190_v31, 920167782 }
  0x31   :  { %v206_v37 = vsel %vm194_vm6, %v184_v25, %v187_v29  ;;  %v200_v38 = vsel %vm196_vm9, %v184_v25, %v199_v35  ;;  %v204_v39 = vsel %vm196_vm9, %v187_v29, %v203_v36  ;;  %v207_v16 = vsel %vm197_vm10, %v193_v28, 1326507024 }
  0x32   :  { %v119_v24 = vadd.s32 536870912, %v118_v34  ;;  %v205_v40 = vsel %vm195_vm8, %v202_v33, %v204_v39  ;;  %v208_v41 = vsel %vm196_vm9, %v190_v31, %v207_v16  ;;  %v201_v42 = vsel %vm195_vm8, %v198_v32, %v200_v38 }
  0x33   :  { %v209_v43 = vsel %vm195_vm8, %v206_v37, %v208_v41  ;;  %v2398_v44 = vmul.u32.u64.low %v210_v20, %v205_v40  ;;  %v2399_v45 = vmul.u32.u64.high %v210_v20, %v205_v40, %v2398_v44  ;;  %v217_v51 = vmul.u32 %v210_v20, %v201_v42 }
  0x34   :  { %v120_v46 = vshrl.u32 %v119_v24, 30  ;;  %v2401_v47 = vmul.u32.u64.low %v210_v20, %v209_v43  ;;  %v2402_v48 = vmul.u32.u64.high %v210_v20, %v209_v43, %v2401_v47  ;;  %v114_v62 = vadd.s32 %v2384_v10, %v2381_v9 }
  0x35   :  { %v220_v52 = vadd.s32 1, %v2399_v45  ;;  %vm150_vm8 = vweird.f32 %v2348_v4 }
  0x36   :  { %v121_v50 = vshll.u32 %v120_v46, 30  ;;  %vm219_vm11 = vc.u32 %v2402_v48, %v2398_v44  ;;  %v218_v27 = vadd.s32 %v2398_v44, %v2402_v48  ;;  %v144_v26 = vsub.s32 4, %v120_v46 }
  0x37   :  { %v221_v54 = vsel %vm219_vm11, %v220_v52, %v2399_v45 }
  0x38   :  { %v122_v53 = vsub.s32 %v118_v34, %v121_v50  ;;  %v222_v56 = vadd.s32 %v221_v54, %v217_v51  ;;  %v145_v34 = vsel %vm60_vm14, %v144_v26, %v120_v46 }
  0x39   :  { %v147_v16 = vsel %vm59_vm15, 0, %v145_v34 }
  0x3a   :  { %v124_v55 = vsub.s32 0, %v122_v53  ;;  %v223_v57 = vadd.s32 536870912, %v222_v56  ;;  %v151_v40 = vadd.s32 3, %v147_v16  ;;  %v385_v43 = vand.u32 3, %v147_v16 }
  0x3c   :  { %v1853_v49 = vmin.u32 %v124_v55, %v122_v53  ;;  %v224_v59 = vshrl.u32 %v223_v57, 30  ;;  %v152_v44 = vand.u32 3, %v151_v40  ;;  %vm390_vm2 = vcmp.eq.s32.totalorder %v385_v43, 2 }
  0x3d   :  { %vm387_vm4 = vcmp.eq.s32.totalorder %v385_v43, 0  ;;  %vm386_vm6 = vcmp.lt.s32.totalorder %v385_v43, 2 }
  0x3e   :  { %v126_v58 = vclz %v1853_v49  ;;  %v225_v61 = vshll.u32 %v224_v59, 30  ;;  %v248_v6 = vsub.s32 4, %v224_v59  ;;  %vm157_vm3 = vcmp.eq.s32.totalorder %v152_v44, 2 }
  0x3f   :  { %vm154_vm5 = vcmp.eq.s32.totalorder %v152_v44, 0  ;;  %vm153_vm7 = vcmp.lt.s32.totalorder %v152_v44, 2 }
  0x40   :  { %v1854_v60 = vadd.s32 4294967294, %v126_v58  ;;  %v226_v0 = vsub.s32 %v222_v56, %v225_v61  ;;  %v249_v46 = vsel %vm164_vm0, %v248_v6, %v224_v59 }
  0x41   :  { %v251_v50 = vsel %vm163_vm1, 0, %v249_v46 }
  0x42   :  { %vm1855_vm12 = vcmp.lt.s32.totalorder %v1854_v60, 0  ;;  %v228_v12 = vsub.s32 0, %v226_v0  ;;  %v255_v55 = vadd.s32 3, %v251_v50  ;;  %v488_v61 = vand.u32 3, %v251_v50 }
  0x43   :  { %v129_v63 = vsel %vm1855_vm12, 0, %v1854_v60 }
  0x44   :  { %v130_v1 = vsub.s32 32, %v129_v63  ;;  %v131_v3 = vshll.u32 %v122_v53, %v129_v63  ;;  %v134_v7 = vsub.s32 4294967266, %v129_v63  ;;  %v1857_v15 = vmin.u32 %v228_v12, %v226_v0 }
  0x45   :  { %vm493_vm9 = vcmp.eq.s32.totalorder %v488_v61, 2  ;;  %vm490_vm11 = vcmp.eq.s32.totalorder %v488_v61, 0 }
  0x46   :  { %v132_v13 = vshrl.u32 %v114_v62, %v130_v1  ;;  %v135_v14 = vadd.s32 127, %v134_v7  ;;  %v230_v19 = vclz %v1857_v15  ;;  %v256_v62 = vand.u32 3, %v255_v55 }
  0x48   :  { %v133_v17 = vor.u32 %v132_v13, %v131_v3  ;;  %v136_v18 = vshll.u32 %v135_v14, 23  ;;  %v1858_v23 = vadd.s32 4294967294, %v230_v19  ;;  %vm261_vm10 = vcmp.eq.s32.totalorder %v256_v62, 2 }
  0x49   :  { %vm258_vm12 = vcmp.eq.s32.totalorder %v256_v62, 0  ;;  %v278_v19 = vlaneseq }
  0x4a   :  { %v137_v21 = vor.u32 4788187, %v136_v18  ;;  %v140_v22 = vcvt.s32.f32 %v133_v17  ;;  %vm1859_vm13 = vcmp.lt.s32.totalorder %v1858_v23, 0 }
  0x4b   :  { %v233_v10 = vsel %vm1859_vm13, 0, %v1858_v23  ;;  %vm489_vm13 = vcmp.lt.s32.totalorder %v488_v61, 2  ;;  %v1868_v23 = vld [vmem:[%s2707_s4 + $0x1] ss:$4 sm:$0x3] }
  0x4c   :  { %v138_v25 = vand.u32 2147483647, %v137_v21  ;;  %v234_v29 = vsub.s32 32, %v233_v10  ;;  %v235_v20 = vshll.u32 %v226_v0, %v233_v10  ;;  %v238_v31 = vsub.s32 4294967266, %v233_v10 }
  0x4d   :  { %v2421_v21 = vshrl.u32 %v278_v19, 7  ;;  %v2174_v19 = vld [vmem:[%s2708_s5 + $0x38] sm:$0xff]  }
  0x4e   :  { %v141_v9 = vmul.f32 %v140_v22, %v138_v25  ;;  %v236_v30 = vshrl.u32 %v218_v27, %v234_v29  ;;  %v239_v32 = vadd.s32 127, %v238_v31  ;;  %v266_v25 = vld [vmem:[%s2707_s4] ss:$4 sm:$0x3] }
  0x4f   :  { %v2424_v22 = vsub.s32 0, %v2421_v21  ;;  %v1869_v29 = vld [vmem:[%s2707_s4 + $0x2] ss:$4 sm:$0x3] }
  0x50   :  { %v142_v28 = vxor.u32 2147483648, %v141_v9  ;;  %v237_v36 = vor.u32 %v236_v30, %v235_v20  ;;  %v240_v37 = vshll.u32 %v239_v32, 23 }
  0x51   :  { %v281_v10 = vrot.slane %v266_v25, %v2424_v22  ;;  %v545_v20 = vrot.slane %v1869_v29, %v2424_v22 }
  0x52   :  { %v143_v33 = vsel %vm60_vm14, %v142_v28, %v141_v9  ;;  %v241_v38 = vor.u32 4788187, %v240_v37  ;;  %v244_v39 = vcvt.s32.f32 %v237_v36  ;;  %vm257_vm14 = vcmp.lt.s32.totalorder %v256_v62, 2  ;;  %v1870_v36 = vld [vmem:[%s2707_s4 + $0x3] ss:$4 sm:$0x3] }
  0x53   :  { %v146_v35 = vsel %vm59_vm15, %v2348_v4, %v143_v33  ;;  %vm254_vm15 = vweird.f32 %v2355_v8 }
  0x54   :  { %2211 = vcosq.f32 %v146_v35  ;;  %v242_v24 = vand.u32 2147483647, %v241_v38 }
  0x55   :  { %2213 = vsinq.f32 %v146_v35 }
  0x56   :  { %v245_v41 = vmul.f32 %v244_v39, %v242_v24  ;;  %v566_v24 = vrot.slane %v1870_v36, %v2424_v22 }
  0x58   :  { %v246_v42 = vxor.u32 2147483648, %v245_v41 }
  0x5a   :  { %v247_v45 = vsel %vm164_vm0, %v246_v42, %v245_v41  ;;  %vm621_vm0 = vcmask 64512  }
  0x5b   :  { %v250_v47 = vsel %vm163_vm1, %v2355_v8, %v247_v45  ;;  %v2427_v8 = vsub.s32 1, %v2421_v21  ;;  %vm644_vm1 = vcmask 130048  }
  0x5c   :  { %2215 = vcosq.f32 %v250_v47 }
  0x5d   :  { %2217 = vsinq.f32 %v250_v47  ;;  %v518_v9 = vrot.slane %v1868_v23, %v2427_v8  ;;  %v285_v26 = vrot.slane %v266_v25, %v2427_v8  ;;  %v549_v31 = vrot.slane %v1869_v29, %v2427_v8  ;;  %v2180_v29 = vld [vmem:[%s2708_s5 + $0x20] sm:$0xff]  }
  0x5e   :  { %v570_v40 = vrot.slane %v1870_v36, %v2427_v8 }
  0x61   :  { %v2212_v48 = vpop.eup %2211 }
  0x62   :  { %v2214_v51 = vpop.eup %2213  ;;  %v158_v52 = vxor.u32 2147483648, %v2212_v48 }
  0x63   :  { %v155_v53 = vxor.u32 2147483648, %v2214_v51 }
  0x64   :  { %v392_v11 = vsel %vm390_vm2, %v158_v52, %v2214_v51  ;;  %v159_v54 = vsel %vm157_vm3, %v158_v52, %v2214_v51  ;;  %vm2275_vm2 = vmmov 0   ;;  %vm911_vm3 = vcmask 523264  }
  0x65   :  { %v389_v56 = vsel %vm387_vm4, %v2212_v48, %v155_v53  ;;  %v156_v49 = vsel %vm154_vm5, %v2212_v48, %v155_v53  ;;  %vm956_vm4 = vcmask 261120  }
  0x66   :  { %v393_v57 = vsel %vm386_vm6, %v389_v56, %v392_v11  ;;  %v160_v58 = vsel %vm153_vm7, %v156_v49, %v159_v54 }
  0x67   :  { %v394_v59 = vsel %vm150_vm8, nan, %v393_v57  ;;  %v161_v60 = vsel %vm150_vm8, nan, %v160_v58 }
  0x68   :  { %502 = vperm.xlu1 %2171, %v394_v59   ;;  %269 = vperm.xlu0 %2170, %v161_v60  }
  0x69   :  { %v2216_v63 = vpop.eup %2215 }
  0x6a   :  { %v2218_v0 = vpop.eup %2217  ;;  %v262_v1 = vxor.u32 2147483648, %v2216_v63 }
  0x6b   :  { %v259_v4 = vxor.u32 2147483648, %v2218_v0 }
  0x6c   :  { %v495_v3 = vsel %vm493_vm9, %v262_v1, %v2218_v0  ;;  %v263_v7 = vsel %vm261_vm10, %v262_v1, %v2218_v0 }
  0x6d   :  { %v492_v12 = vsel %vm490_vm11, %v2216_v63, %v259_v4  ;;  %v260_v13 = vsel %vm258_vm12, %v2216_v63, %v259_v4 }
  0x6e   :  { %v496_v14 = vsel %vm489_vm13, %v492_v12, %v495_v3  ;;  %v264_v15 = vsel %vm257_vm14, %v260_v13, %v263_v7 }
  0x6f   :  { %v497_v17 = vsel %vm254_vm15, nan, %v496_v14  ;;  %v265_v18 = vsel %vm254_vm15, nan, %v264_v15 }
  0x70   :  { %507 = vperm.xlu1 %2171, %v497_v17   ;;  %274 = vperm.xlu0 %2170, %v265_v18   ;;  %v2173_v18 = vld [vmem:[%s2708_s5 + $0x78] sm:$0xff]  }
  0x71   :  { %1972 = vmatprep.subr.bf16.mxu1 %v2173_v18 }
  0x72   :  { %1973 = vmatpush3.bf16.msra.mxu1 %v2174_v19 }
  0x74   :  { %538 = vperm.xlu1 %2171, %v2350_v5   ;;  %533 = vperm.xlu0 %2170, %v2342_v2   ;;  %v514_v2 = vrot.slane %v1868_v23, %v2424_v22  ;;  %v2175_v23 = vld [vmem:[%s2708_s5 + $0x70] sm:$0xff]  }
  0x75   :  { %1974 = vmatprep.subr.bf16.mxu1 %v2175_v23 }
  0xe3   :  { %v503_v5 = vpop.permute.xlu1 %502  ;;  %v270_v27 = vpop.permute.xlu0 %269 }
  0xe4   :  { %v521_v28 = vmul.f32 %v514_v2, %v503_v5  ;;  %v522_v30 = vmul.f32 %v518_v9, %v503_v5  ;;  %v288_v32 = vmul.f32 %v281_v10, %v270_v27  ;;  %v289_v33 = vmul.f32 %v285_v26, %v270_v27  ;;  %v2176_v27 = vld [vmem:[%s2708_s5 + $0x30] sm:$0xff]  }
  0xe5   :  { %1975 = vmatpush3.bf16.msra.mxu1 %v2176_v27 }
  0xe6   :  { %v525_v41 = vadd.f32 %v521_v28, %v288_v32  ;;  %v526_v6 = vadd.f32 %v522_v30, %v289_v33  ;;  %v607_v32 = vld [vmem:[%s2705_s2] sm:$0xff]  ;;  %v608_v33 = vld [vmem:[%s2705_s2 + $0x8] sm:$0xff] }
  0xeb   :  { %v508_v34 = vpop.permute.xlu1 %507  ;;  %v275_v35 = vpop.permute.xlu0 %274 }
  0xec   :  { %v523_v37 = vmul.f32 %v514_v2, %v508_v34  ;;  %v524_v38 = vmul.f32 %v518_v9, %v508_v34  ;;  %v290_v39 = vmul.f32 %v281_v10, %v275_v35  ;;  %v291_v16 = vmul.f32 %v285_v26, %v275_v35  ;;  %v2177_v9 = vld [vmem:[%s2708_s5 + $0x68] sm:$0xff]   ;;  %v2179_v26 = vld [vmem:[%s2708_s5 + $0x60] sm:$0xff]  }
  0xed   :  { %v2178_v10 = vld [vmem:[%s2708_s5 + $0x28] sm:$0xff]   ;;  %1976 = vmatprep.subr.bf16.mxu1 %v2177_v9 }
  0xee   :  { %v527_v42 = vadd.f32 %v523_v37, %v290_v39  ;;  %v528_v43 = vadd.f32 %v524_v38, %v291_v16  ;;  %1977 = vmatpush3.bf16.msra.mxu1 %v2178_v10 }
  0xef   :  { %v539_v44 = vpop.permute.xlu1 %538  ;;  %v534_v45 = vpop.permute.xlu0 %533  ;;  %1978 = vmatprep.subr.bf16.mxu1 %v2179_v26 }
  0xf0   :  { %v554_v46 = vmul.f32 %v545_v20, %v539_v44  ;;  %v555_v47 = vmul.f32 %v549_v31, %v539_v44  ;;  %v552_v48 = vmul.f32 %v545_v20, %v534_v45  ;;  %v553_v50 = vmul.f32 %v549_v31, %v534_v45  ;;  %v2181_v20 = vld [vmem:[%s2708_s5 + $0x58] sm:$0xff]   ;;  %v2187_v44 = vld [vmem:[%s2708_s5 + $0x40] sm:$0xff]  }
  0xf1   :  { %v2182_v31 = vld [vmem:[%s2708_s5 + $0x18] sm:$0xff]   ;;  %v2188_v45 = vld [vmem:[%s2708_s5] sm:$0xff]  }
  0xf2   :  { %v558_v51 = vadd.f32 %v554_v46, %v527_v42  ;;  %v559_v52 = vadd.f32 %v555_v47, %v528_v43  ;;  %v556_v53 = vadd.f32 %v552_v48, %v525_v41  ;;  %v557_v11 = vadd.f32 %v553_v50, %v526_v6  ;;  %1979 = vmatpush3.bf16.msra.mxu1 %v2180_v29  ;;  %v2183_v41 = vld [vmem:[%s2708_s5 + $0x50] sm:$0xff]   ;;  %v2185_v42 = vld [vmem:[%s2708_s5 + $0x48] sm:$0xff]  }
  0xf3   :  { %1980 = vmatprep.subr.bf16.mxu1 %v2181_v20  ;;  %v2184_v6 = vld [vmem:[%s2708_s5 + $0x10] sm:$0xff]   ;;  %v2186_v43 = vld [vmem:[%s2708_s5 + $0x8] sm:$0xff]   ;;  %v2274_v46 = vmov 0.0   ;;  %v632_v47 = vstv %s631_s26 }
  0xf4   :  { %v575_v54 = vadd.f32 %v566_v24, %v558_v51  ;;  %v576_v55 = vadd.f32 %v570_v40, %v559_v52  ;;  %v573_v56 = vadd.f32 %v566_v24, %v556_v53  ;;  %v574_v49 = vadd.f32 %v570_v40, %v557_v11  ;;  %v2488_v40 = vld [vmem:[%s2706_s3] sm:$0xff]  }
  0xf6   :  { %v1873_v57 = vmul.f32 -1.442695, %v575_v54  ;;  %v1874_v58 = vmul.f32 -1.442695, %v576_v55  ;;  %v1871_v59 = vmul.f32 -1.442695, %v573_v56  ;;  %1981 = vmatpush3.bf16.msra.mxu1 %v2182_v31 }
  0xf7   :  { %v1872_v60 = vmul.f32 -1.442695, %v574_v49  ;;  %1982 = vmatprep.subr.bf16.mxu1 %v2183_v41 }
  0xf8   :  { %2219 = vpow2.f32 %v1873_v57 }
  0xf9   :  { %2221 = vpow2.f32 %v1874_v58 }
  0xfa   :  { %2223 = vpow2.f32 %v1871_v59  ;;  %1983 = vmatpush3.bf16.msra.mxu1 %v2184_v6 }
  0xfb   :  { %2225 = vpow2.f32 %v1872_v60  ;;  %1984 = vmatprep.subr.bf16.mxu1 %v2185_v42 }
  0xfe   :  { %1985 = vmatpush3.bf16.msra.mxu1 %v2186_v43 }
  0xff   :  { %1986 = vmatprep.subr.bf16.mxu1 %v2187_v44 }
 0x102   :  { %1987 = vmatpush3.bf16.msra.mxu1 %v2188_v45 }
 0x103   :  { %2057 = vmatprep.subr.bf16.mxu1 %v2274_v46 }
 0x105   :  { %v2220_v61 = vpop.eup %2219 }
 0x106   :  { %v2222_v62 = vpop.eup %2221  ;;  %v591_v1 = vadd.f32 1.0, %v2220_v61  ;;  %v2189_v61 = vld [vmem:[%s2710_s7 + $0x18] sm:$0xff]  }
 0x107   :  { %v2224_v63 = vpop.eup %2223  ;;  %v592_v3 = vadd.f32 1.0, %v2222_v62  ;;  %v2190_v62 = vld [vmem:[%s2710_s7 + $0x10] sm:$0xff]  }
 0x108   :  { %v2226_v0 = vpop.eup %2225  ;;  %v589_v4 = vadd.f32 1.0, %v2224_v63  ;;  %v2191_v63 = vld [vmem:[%s2710_s7 + $0x8] sm:$0xff]  }
 0x109   :  { %v590_v7 = vadd.f32 1.0, %v2226_v0  ;;  %v2192_v0 = vld [vmem:[%s2710_s7] sm:$0xff]  }
 0x10a   :  { %2227 = vrcp.f32 %v589_v4 }
 0x10b   :  { %2229 = vrcp.f32 %v590_v7  ;;  %v1877_v7 = vld [vmem:[%s2711_s8] ss:$0 sm:$0xff] }
 0x10c   :  { %2231 = vrcp.f32 %v591_v1 }
 0x10d   :  { %2233 = vrcp.f32 %v592_v3 }
 0x117   :  { %v2228_v12 = vpop.eup %2227 }
 0x118   :  { %v2230_v13 = vpop.eup %2229  ;;  %v601_v14 = vmul.f32 %v2228_v12, %v573_v56 }
 0x119   :  { %v2232_v15 = vpop.eup %2231  ;;  %v602_v17 = vmul.f32 %v2230_v13, %v574_v49 }
 0x11a   :  { %v2234_v25 = vpop.eup %2233  ;;  %613 = vrot.lane.b32.xlu0 %v601_v14, %s2273_s18  ;;  %v603_v5 = vmul.f32 %v2232_v15, %v575_v54 }
 0x11b   :  { %615 = vrot.lane.b32.xlu1 %v602_v17, %s2273_s18  ;;  %v604_v2 = vmul.f32 %v2234_v25, %v576_v55  ;;  %v882_v25 = vld [vmem:[%s2712_s9] sm:$0x7] }
 0x11e   :  { %617 = vrot.lane.b32.xlu0 %v603_v5, %s2273_s18  ;;  %v886_v5 = vrot.slane %v882_v25, %v2424_v22 }
 0x11f   :  { %619 = vrot.lane.b32.xlu1 %v604_v2, %s2273_s18 }
 0x18c   :  { %v614_v28 = vpop.permute.xlu0 %613 }
 0x18d   :  { %v616_v30 = vpop.permute.xlu1 %615  ;;  %v628_v35 = vsel %vm621_vm0, %v607_v32, %v614_v28 }
 0x18e   :  { %v622_v38 = vsel %vm621_vm0, %v614_v28, %v616_v30  ;;  %v633_v51 = vmul.f32 %v632_v47, %v628_v35 }
 0x18f   :  { %v634_v11 = vmul.f32 %v632_v47, %v622_v38 }
 0x190   :  { %v618_v34 = vpop.permute.xlu0 %617 }
 0x191   :  { %v620_v36 = vpop.permute.xlu1 %619  ;;  %v629_v37 = vsel %vm621_vm0, %v608_v33, %v618_v34 }
 0x192   :  { %v623_v39 = vsel %vm621_vm0, %v618_v34, %v620_v36  ;;  %v637_v16 = vpack.c.bf16 %v629_v37, %v628_v35  ;;  %v635_v52 = vmul.f32 %v632_v47, %v629_v37 }
 0x193   :  { %v638_v24 = vpack.c.bf16 %v623_v39, %v622_v38  ;;  %v636_v54 = vmul.f32 %v632_v47, %v623_v39 }
 0x195   :  { %662 = vmatprep.subr.bf16.mxu0 %v638_v24 }
 0x196   :  { %663 = vmatpush1.bf16.msra.mxu0 %v637_v16 }
 0x197   :  { %2031 = vmatprep.subr.bf16.mxu0 %v2274_v46 }
 0x199   :  { %1876 = vmatmul.mubr.msk.bf16.vlgmr.msra.gmra.mxu0 %vm644_vm1, %v2488_v40 }
 0x19a   :  { %2032 = vmatpush3.bf16.msra.mxu0 %v2189_v61  ;;  %2039 = vmatprep.mubr.msk.bf16.mxu0 %vm2275_vm2, %v2274_v46 }
 0x19b   :  { %2033 = vmatprep.subr.bf16.mxu0 %v2274_v46 }
 0x19e   :  { %2034 = vmatpush3.bf16.msra.mxu0 %v2190_v62 }
 0x19f   :  { %2035 = vmatprep.subr.bf16.mxu0 %v2274_v46 }
 0x1a2   :  { %2036 = vmatpush3.bf16.msra.mxu0 %v2191_v63 }
 0x1a3   :  { %2037 = vmatprep.subr.bf16.mxu0 %v2274_v46 }
 0x1a6   :  { %2038 = vmatpush3.bf16.msra.mxu0 %v2192_v0  ;;  %v2194_v0 = vld [vmem:[%s2709_s6] sm:$0xff]  }
 0x1a7   :  { %2043 = vmatprep.subr.bf16.mxu0 %v2274_v46 }
 0x259   :  { %v682_v48 = vpop.f32.mrf.mxu0 }
 0x25a   :  { %v691_v55 = vadd.f32 %v682_v48, %v633_v51 }
 0x25b   :  { %v684_v50 = vpop.f32.mrf.mxu0 }
 0x25c   :  { %v692_v57 = vadd.f32 %v684_v50, %v634_v11 }
 0x25d   :  { %v686_v53 = vpop.f32.mrf.mxu0 }
 0x25e   :  { %v693_v56 = vadd.f32 %v686_v53, %v635_v52  ;;  %v2547_v53 = vsub.s32 2, %v2421_v21  ;;  %v2193_v21 = vld [vmem:[%s2709_s6 + $0x8] sm:$0xff]  }
 0x25f   :  { %v688_v49 = vpop.f32.mrf.mxu0 }
 0x260   :  { %v695_v58 = vpack.c.bf16 %v693_v56, %v691_v55  ;;  %v694_v59 = vadd.f32 %v688_v49, %v636_v54  ;;  %v1000_v55 = vrot.slane %v882_v25, %v2427_v8  ;;  %v1006_v49 = vrot.slane %v882_v25, %v2547_v53  ;;  %v2197_v25 = vld [vmem:[%s2710_s7 + $0x28] sm:$0xff]  }
 0x262   :  { %v696_v60 = vpack.c.bf16 %v694_v59, %v692_v57 }
 0x264   :  { %862 = vmatprep.mubr.bf16.mxu1 %v696_v60 }
 0x265   :  { %863 = vmatmul.mubr.bf16.vlgmr.msra.gmra.mxu1 %v695_v58 }
 0x266   :  { %2065 = vmatprep.mubr.msk.bf16.mxu1 %vm2275_vm2, %v2274_v46 }
 0x325   :  { %v1988_v1 = vpop.f32.mrf.mxu1 }
 0x327   :  { %v1989_v4 = vpop.f32.mrf.mxu1 }
 0x328   :  { %v1990_v3 = vadd.f32 %v1989_v4, %v1988_v1  ;;  %v2195_v1 = vld [vmem:[%s2710_s7 + $0x38] sm:$0xff]  }
 0x329   :  { %v1991_v12 = vpop.f32.mrf.mxu1  ;;  %2058 = vmatpush3.bf16.msra.mxu1 %v2195_v1 }
 0x32a   :  { %v865_v14 = vadd.f32 %v1990_v3, %v1877_v7  ;;  %2059 = vmatprep.subr.bf16.mxu1 %v2274_v46  ;;  %v1053_v3 = vstv %s1052_s28  ;;  %s1920_s28 = sld [smem:[#allocation2 + $0x2]] }
 0x32b   :  { %v1992_v13 = vpop.f32.mrf.mxu1 }
 0x32c   :  { %v1993_v15 = vadd.f32 %v1992_v13, %v1991_v12  ;;  %v871_v18 = vmax.f32 %v865_v14, 0.0 }
 0x32e   :  { %v868_v17 = vadd.f32 %v1993_v15, %v1877_v7 }
 0x330   :  { %v872_v19 = vmax.f32 %v868_v17, 0.0  ;;  %s1305_s29 = sadd.f32 1.0, %s1920_s28 }
 0x332   :  { %v873_v23 = vpack.c.bf16 %v872_v19, %v871_v18 }
 0x334   :  { %2040 = vmatmul.mubr.msk.bf16.vlgmr.msra.gmra.mxu0 %vm911_vm3, %v873_v23  ;;  %v2196_v23 = vld [vmem:[%s2710_s7 + $0x30] sm:$0xff]  }
 0x335   :  { %2045 = vmatprep.mubr.msk.bf16.mxu0 %vm2275_vm2, %v2274_v46  ;;  %2060 = vmatpush3.bf16.msra.mxu1 %v2196_v23  ;;  %v2200_v23 = vld [vmem:[%s2709_s6 + $0x10] sm:$0xff]  }
 0x336   :  { %2061 = vmatprep.subr.bf16.mxu1 %v2274_v46 }
 0x339   :  { %2062 = vmatpush3.bf16.msra.mxu1 %v2197_v25  ;;  %v2201_v25 = vld [vmem:[%s2710_s7 + $0x58] sm:$0xff]  }
 0x33a   :  { %2063 = vmatprep.subr.bf16.mxu1 %v2274_v46 }
 0x3f4   :  { %v949_v27 = vpop.f32.mrf.mxu0 }
 0x3f5   :  { %v950_v2 = vadd.f32 %v949_v27, %v886_v5  ;;  %v1901_v27 = vld [vmem:[%s2711_s8 + $0x1] ss:$0 sm:$0xff] }
 0x3f6   :  { %v2041_v9 = vpop.f32.mrf.mxu0 }
 0x3f7   :  { %v970_v29 = vmul.f32 %v950_v2, %v950_v2  ;;  %v957_v31 = vsel %vm956_vm4, %v950_v2, 0.0 }
 0x3f8   :  { %v952_v10 = vpop.f32.mrf.mxu0 }
 0x3f9   :  { %v953_v26 = vadd.f32 %v952_v10, %v886_v5  ;;  %v972_v33 = vsel %vm956_vm4, %v970_v29, 0.0  ;;  %v2198_v5 = vld [vmem:[%s2710_s7 + $0x20] sm:$0xff]  }
 0x3fa   :  { %v2042_v20 = vpop.f32.mrf.mxu0  ;;  %2064 = vmatpush3.bf16.msra.mxu1 %v2198_v5 }
 0x3fb   :  { %v958_v28 = vsel %vm956_vm4, %v953_v26, 0.0  ;;  %v971_v30 = vmul.f32 %v953_v26, %v953_v26  ;;  %2083 = vmatprep.subr.bf16.mxu1 %v2274_v46 }
 0x3fc   :  { %v959_v32 = vadd.f32 %v958_v28, %v957_v31 }
 0x3fd   :  { %v973_v34 = vsel %vm956_vm4, %v971_v30, 0.0 }
 0x3fe   :  { %960 = vadd.xlane.f32.xlu0 %v959_v32  ;;  %v974_v35 = vadd.f32 %v973_v34, %v972_v33  ;;  %v1913_v32 = vld [vmem:[%s2712_s9 + $0x4] sm:$0x7] }
 0x3ff   :  { %v1141_v33 = vrot.slane %v1913_v32, %v2424_v22  ;;  %v1253_v1 = vrot.slane %v1913_v32, %v2427_v8 }
 0x400   :  { %975 = vadd.xlane.f32.xlu1 %v974_v35 }
 0x487   :  { %v961_v36 = vpop.xlane.xlu0 %960 }
 0x488   :  { %v962_v37 = vrot.slane %v961_v36, 4 }
 0x489   :  { %v976_v38 = vpop.xlane.xlu1 %975 }
 0x48a   :  { %v963_v39 = vadd.f32 %v962_v37, %v961_v36  ;;  %v977_v16 = vrot.slane %v976_v38, 4 }
 0x48c   :  { %v964_v24 = vrot.slane %v963_v39, 2  ;;  %v978_v41 = vadd.f32 %v977_v16, %v976_v38 }
 0x48e   :  { %v979_v6 = vrot.slane %v978_v41, 2  ;;  %v965_v42 = vadd.f32 %v964_v24, %v963_v39 }
 0x490   :  { %v966_v43 = vrot.slane %v965_v42, 1  ;;  %v980_v44 = vadd.f32 %v979_v6, %v978_v41 }
 0x492   :  { %v967_v45 = vadd.f32 %v966_v43, %v965_v42  ;;  %v981_v47 = vrot.slane %v980_v44, 1 }
 0x494   :  { %2135 = vpush %v967_v45  ;;  %v982_v48 = vadd.f32 %v981_v47, %v980_v44 }
 0x496   :  { %2137 = vpush %v982_v48 }
 0x4c5   :  { %s2136_s17 = spop %2135 }
 0x4c6   :  { %s969_s18 = smul.f32 0.001953125, %s2136_s17 }
 0x4c7   :  { %s2138_s19 = spop %2137 }
 0x4c8   :  { %s985_s20 = smul.f32 %s969_s18, %s969_s18  ;;  %v987_v52 = vstv %s969_s18 }
 0x4c9   :  { %s984_s21 = smul.f32 0.001953125, %s2138_s19  ;;  %v988_v11 = vsub.f32 %v950_v2, %v987_v52  ;;  %v989_v54 = vsub.f32 %v953_v26, %v987_v52 }
 0x4cb   :  { %s986_s3 = ssub.f32 %s984_s21, %s985_s20 }
 0x4cd   :  { %s990_s22 = sadd.f32 1e-05, %s986_s3 }
 0x4cf   :  { %v991_v50 = vstv %s990_s22 }
 0x4d0   :  { %2235 = vrsqrt.f32 %v991_v50 }
 0x4dd   :  { %v2236_v51 = vpop.eup %2235 }
 0x4de   :  { %2139 = vpush %v2236_v51 }
 0x50f   :  { %s2140_s23 = spop %2139 }
 0x510   :  { %v994_v56 = vstv %s2140_s23 }
 0x511   :  { %v995_v57 = vmul.f32 %v994_v56, %v988_v11  ;;  %v996_v58 = vmul.f32 %v994_v56, %v989_v54 }
 0x513   :  { %v1001_v59 = vmul.f32 %v1000_v55, %v995_v57  ;;  %v1002_v60 = vmul.f32 %v1000_v55, %v996_v58 }
 0x515   :  { %v1007_v61 = vadd.f32 %v1006_v49, %v1001_v59  ;;  %v1008_v62 = vadd.f32 %v1006_v49, %v1002_v60 }
 0x517   :  { %v1009_v63 = vpack.c.bf16 %v1008_v62, %v1007_v61  ;;  %v1054_v12 = vmul.f32 %v1053_v3, %v1007_v61  ;;  %v1055_v13 = vmul.f32 %v1053_v3, %v1008_v62  ;;  %v1259_v3 = vrot.slane %v1913_v32, %v2547_v53  ;;  %v2203_v32 = vld [vmem:[%s2710_s7 + $0x48] sm:$0xff]  }
 0x519   :  { %2044 = vmatpush3.bf16.msra.mxu0 %v1009_v63 }
 0x51a   :  { %2049 = vmatprep.subr.bf16.mxu0 %v2274_v46 }
 0x51c   :  { %2046 = vmatmul.mubr.msk.bf16.vlgmr.msra.gmra.mxu0 %vm644_vm1, %v2488_v40 }
 0x51d   :  { %2053 = vmatprep.mubr.msk.bf16.mxu0 %vm2275_vm2, %v2274_v46  ;;  %2050 = vmatpush3.bf16.msra.mxu0 %v2193_v21 }
 0x51e   :  { %2051 = vmatprep.subr.bf16.mxu0 %v2274_v46 }
 0x521   :  { %2052 = vmatpush3.bf16.msra.mxu0 %v2194_v0 }
 0x522   :  { %2069 = vmatprep.subr.bf16.mxu0 %v2274_v46 }
 0x5dc   :  { %v1044_v4 = vpop.f32.mrf.mxu0 }
 0x5dd   :  { %v1056_v15 = vadd.f32 %v1054_v12, %v1044_v4 }
 0x5de   :  { %v2047_v7 = vpop.f32.mrf.mxu0 }
 0x5e0   :  { %v1047_v14 = vpop.f32.mrf.mxu0 }
 0x5e1   :  { %v1057_v17 = vadd.f32 %v1055_v13, %v1047_v14 }
 0x5e2   :  { %v2048_v18 = vpop.f32.mrf.mxu0 }
 0x5e3   :  { %v1058_v19 = vpack.c.bf16 %v1057_v17, %v1056_v15 }
 0x5e5   :  { %2054 = vmatmul.mubr.msk.bf16.vlgmr.msra.gmra.mxu0 %vm956_vm4, %v1058_v19  ;;  %v2199_v19 = vld [vmem:[%s2709_s6 + $0x18] sm:$0xff]  }
 0x5e6   :  { %2071 = vmatprep.mubr.msk.bf16.mxu0 %vm2275_vm2, %v2274_v46 }
 0x6a5   :  { %v1117_v2 = vpop.f32.mrf.mxu0 }
 0x6a6   :  { %v1118_v10 = vadd.f32 %v1901_v27, %v1117_v2 }
 0x6a7   :  { %v2055_v9 = vpop.f32.mrf.mxu0 }
 0x6a8   :  { %v1124_v31 = vmax.f32 %v1118_v10, 0.0 }
 0x6a9   :  { %v1120_v26 = vpop.f32.mrf.mxu0 }
 0x6aa   :  { %v1121_v29 = vadd.f32 %v1901_v27, %v1120_v26  ;;  %v1306_v27 = vstv %s1305_s29  ;;  %s1944_s29 = sld [smem:[#allocation2 + $0x3]] }
 0x6ab   :  { %v2056_v20 = vpop.f32.mrf.mxu0 }
 0x6ac   :  { %v1125_v28 = vmax.f32 %v1121_v29, 0.0 }
 0x6ae   :  { %v1126_v30 = vpack.c.bf16 %v1125_v28, %v1124_v31 }
 0x6b0   :  { %2066 = vmatmul.mubr.msk.bf16.vlgmr.msra.gmra.mxu1 %vm911_vm3, %v1126_v30  ;;  %v2202_v30 = vld [vmem:[%s2710_s7 + $0x50] sm:$0xff]   ;;  %s1559_s30 = sadd.f32 1.0, %s1944_s29 }
 0x6b1   :  { %2091 = vmatprep.mubr.msk.bf16.mxu1 %vm2275_vm2, %v2274_v46  ;;  %2084 = vmatpush3.bf16.msra.mxu1 %v2201_v25 }
 0x6b2   :  { %2085 = vmatprep.subr.bf16.mxu1 %v2274_v46 }
 0x6b5   :  { %2086 = vmatpush3.bf16.msra.mxu1 %v2202_v30  ;;  %v2206_v30 = vld [vmem:[%s2709_s6 + $0x20] sm:$0xff]  }
 0x6b6   :  { %2087 = vmatprep.subr.bf16.mxu1 %v2274_v46 }
 0x6b9   :  { %2088 = vmatpush3.bf16.msra.mxu1 %v2203_v32 }
 0x6ba   :  { %2089 = vmatprep.subr.bf16.mxu1 %v2274_v46 }
 0x770   :  { %v1203_v34 = vpop.f32.mrf.mxu1 }
 0x771   :  { %v1204_v36 = vadd.f32 %v1203_v34, %v1141_v33  ;;  %v1925_v34 = vld [vmem:[%s2711_s8 + $0x2] ss:$0 sm:$0xff] }
 0x772   :  { %v2067_v35 = vpop.f32.mrf.mxu1 }
 0x773   :  { %v1210_v16 = vsel %vm956_vm4, %v1204_v36, 0.0  ;;  %v1223_v41 = vmul.f32 %v1204_v36, %v1204_v36 }
 0x774   :  { %v1206_v37 = vpop.f32.mrf.mxu1 }
 0x775   :  { %v1207_v38 = vadd.f32 %v1206_v37, %v1141_v33  ;;  %v1225_v44 = vsel %vm956_vm4, %v1223_v41, 0.0  ;;  %v2204_v33 = vld [vmem:[%s2710_s7 + $0x40] sm:$0xff]  }
 0x776   :  { %v2068_v39 = vpop.f32.mrf.mxu1  ;;  %2090 = vmatpush3.bf16.msra.mxu1 %v2204_v33  ;;  %v1560_v33 = vstv %s1559_s30 }
 0x777   :  { %v1211_v24 = vsel %vm956_vm4, %v1207_v38, 0.0  ;;  %v1224_v6 = vmul.f32 %v1207_v38, %v1207_v38  ;;  %2109 = vmatprep.subr.bf16.mxu1 %v2274_v46 }
 0x778   :  { %v1212_v42 = vadd.f32 %v1211_v24, %v1210_v16 }
 0x779   :  { %v1226_v43 = vsel %vm956_vm4, %v1224_v6, 0.0 }
 0x77a   :  { %1213 = vadd.xlane.f32.xlu0 %v1212_v42  ;;  %v1227_v45 = vadd.f32 %v1226_v43, %v1225_v44  ;;  %v1937_v42 = vld [vmem:[%s2712_s9 + $0x8] sm:$0x7] }
 0x77b   :  { %v1395_v43 = vrot.slane %v1937_v42, %v2424_v22  ;;  %v1507_v25 = vrot.slane %v1937_v42, %v2427_v8 }
 0x77e   :  { %1228 = vadd.xlane.f32.xlu0 %v1227_v45 }
 0x803   :  { %v1214_v47 = vpop.xlane.xlu0 %1213 }
 0x804   :  { %v1215_v48 = vrot.slane %v1214_v47, 4 }
 0x806   :  { %v1216_v50 = vadd.f32 %v1215_v48, %v1214_v47 }
 0x807   :  { %v1229_v51 = vpop.xlane.xlu0 %1228 }
 0x808   :  { %v1217_v52 = vrot.slane %v1216_v50, 2  ;;  %v1230_v11 = vrot.slane %v1229_v51, 4 }
 0x80a   :  { %v1231_v54 = vadd.f32 %v1230_v11, %v1229_v51  ;;  %v1218_v55 = vadd.f32 %v1217_v52, %v1216_v50 }
 0x80c   :  { %v1232_v56 = vrot.slane %v1231_v54, 2  ;;  %v1219_v49 = vrot.slane %v1218_v55, 1 }
 0x80e   :  { %v1220_v57 = vadd.f32 %v1219_v49, %v1218_v55  ;;  %v1233_v58 = vadd.f32 %v1232_v56, %v1231_v54 }
 0x810   :  { %2141 = vpush %v1220_v57  ;;  %v1234_v59 = vrot.slane %v1233_v58, 1 }
 0x812   :  { %v1235_v60 = vadd.f32 %v1234_v59, %v1233_v58 }
 0x814   :  { %2143 = vpush %v1235_v60 }
 0x841   :  { %s2142_s18 = spop %2141 }
 0x842   :  { %s1222_s19 = smul.f32 0.001953125, %s2142_s18 }
 0x844   :  { %s1238_s20 = smul.f32 %s1222_s19, %s1222_s19  ;;  %v1240_v63 = vstv %s1222_s19 }
 0x845   :  { %s2144_s21 = spop %2143  ;;  %v1241_v21 = vsub.f32 %v1204_v36, %v1240_v63  ;;  %v1242_v0 = vsub.f32 %v1207_v38, %v1240_v63 }
 0x846   :  { %s1237_s3 = smul.f32 0.001953125, %s2144_s21 }
 0x848   :  { %s1239_s22 = ssub.f32 %s1237_s3, %s1238_s20 }
 0x84a   :  { %s1243_s23 = sadd.f32 1e-05, %s1239_s22 }
 0x84c   :  { %v1244_v61 = vstv %s1243_s23 }
 0x84d   :  { %2237 = vrsqrt.f32 %v1244_v61 }
 0x85a   :  { %v2238_v62 = vpop.eup %2237 }
 0x85b   :  { %2145 = vpush %v2238_v62 }
 0x88c   :  { %s2146_s0 = spop %2145 }
 0x88d   :  { %v1247_v4 = vstv %s2146_s0 }
 0x88e   :  { %v1248_v7 = vmul.f32 %v1247_v4, %v1241_v21  ;;  %v1249_v12 = vmul.f32 %v1247_v4, %v1242_v0 }
 0x890   :  { %v1254_v13 = vmul.f32 %v1253_v1, %v1248_v7  ;;  %v1255_v14 = vmul.f32 %v1253_v1, %v1249_v12 }
 0x892   :  { %v1260_v15 = vadd.f32 %v1259_v3, %v1254_v13  ;;  %v1261_v17 = vadd.f32 %v1259_v3, %v1255_v14 }
 0x894   :  { %v1262_v18 = vpack.c.bf16 %v1261_v17, %v1260_v15  ;;  %v1307_v9 = vmul.f32 %v1306_v27, %v1260_v15  ;;  %v1308_v10 = vmul.f32 %v1306_v27, %v1261_v17  ;;  %v1513_v27 = vrot.slane %v1937_v42, %v2547_v53  ;;  %v2210_v42 = vld [vmem:[%s2710_s7 + $0x60] sm:$0xff]  }
 0x896   :  { %2070 = vmatpush3.bf16.msra.mxu0 %v1262_v18 }
 0x897   :  { %2075 = vmatprep.subr.bf16.mxu0 %v2274_v46 }
 0x899   :  { %2072 = vmatmul.mubr.msk.bf16.vlgmr.msra.gmra.mxu0 %vm644_vm1, %v2488_v40 }
 0x89a   :  { %2079 = vmatprep.mubr.msk.bf16.mxu0 %vm2275_vm2, %v2274_v46  ;;  %2076 = vmatpush3.bf16.msra.mxu0 %v2199_v19 }
 0x89b   :  { %2077 = vmatprep.subr.bf16.mxu0 %v2274_v46 }
 0x89e   :  { %2078 = vmatpush3.bf16.msra.mxu0 %v2200_v23 }
 0x89f   :  { %2095 = vmatprep.subr.bf16.mxu0 %v2274_v46 }
 0x959   :  { %v1297_v5 = vpop.f32.mrf.mxu0 }
 0x95a   :  { %v1309_v29 = vadd.f32 %v1307_v9, %v1297_v5 }
 0x95b   :  { %v2073_v2 = vpop.f32.mrf.mxu0 }
 0x95d   :  { %v1300_v26 = vpop.f32.mrf.mxu0 }
 0x95e   :  { %v1310_v20 = vadd.f32 %v1308_v10, %v1300_v26 }
 0x95f   :  { %v2074_v31 = vpop.f32.mrf.mxu0 }
 0x960   :  { %v1311_v28 = vpack.c.bf16 %v1310_v20, %v1309_v29 }
 0x962   :  { %2080 = vmatmul.mubr.msk.bf16.vlgmr.msra.gmra.mxu0 %vm956_vm4, %v1311_v28  ;;  %v2205_v28 = vld [vmem:[%s2709_s6 + $0x28] sm:$0xff]  }
 0x963   :  { %2097 = vmatprep.mubr.msk.bf16.mxu0 %vm2275_vm2, %v2274_v46 }
 0xa22   :  { %v1371_v35 = vpop.f32.mrf.mxu0 }
 0xa23   :  { %v1372_v37 = vadd.f32 %v1925_v34, %v1371_v35 }
 0xa24   :  { %v2081_v36 = vpop.f32.mrf.mxu0 }
 0xa25   :  { %v1378_v24 = vmax.f32 %v1372_v37, 0.0 }
 0xa26   :  { %v1374_v38 = vpop.f32.mrf.mxu0 }
 0xa27   :  { %v1375_v39 = vadd.f32 %v1925_v34, %v1374_v38 }
 0xa28   :  { %v2082_v16 = vpop.f32.mrf.mxu0 }
 0xa29   :  { %v1379_v41 = vmax.f32 %v1375_v39, 0.0 }
 0xa2b   :  { %v1380_v6 = vpack.c.bf16 %v1379_v41, %v1378_v24  ;;  %v2208_v41 = vld [vmem:[%s2710_s7 + $0x70] sm:$0xff]  }
 0xa2d   :  { %2092 = vmatmul.mubr.msk.bf16.vlgmr.msra.gmra.mxu1 %vm911_vm3, %v1380_v6  ;;  %v2209_v6 = vld [vmem:[%s2710_s7 + $0x68] sm:$0xff]  }
 0xa2e   :  { %2117 = vmatprep.mubr.msk.bf16.mxu1 %vm2275_vm2, %v2274_v46 }
 0xaed   :  { %v1457_v44 = vpop.f32.mrf.mxu1 }
 0xaee   :  { %v1458_v45 = vadd.f32 %v1457_v44, %v1395_v43 }
 0xaef   :  { %v2093_v47 = vpop.f32.mrf.mxu1 }
 0xaf0   :  { %v1477_v51 = vmul.f32 %v1458_v45, %v1458_v45  ;;  %v1464_v11 = vsel %vm956_vm4, %v1458_v45, 0.0 }
 0xaf1   :  { %v1460_v48 = vpop.f32.mrf.mxu1 }
 0xaf2   :  { %v1461_v50 = vadd.f32 %v1460_v48, %v1395_v43  ;;  %v1479_v49 = vsel %vm956_vm4, %v1477_v51, 0.0  ;;  %v1949_v43 = vld [vmem:[%s2711_s8 + $0x3] ss:$0 sm:$0xff] }
 0xaf3   :  { %v2094_v52 = vpop.f32.mrf.mxu1 }
 0xaf4   :  { %v1465_v54 = vsel %vm956_vm4, %v1461_v50, 0.0  ;;  %v1478_v55 = vmul.f32 %v1461_v50, %v1461_v50 }
 0xaf5   :  { %v1466_v56 = vadd.f32 %v1465_v54, %v1464_v11 }
 0xaf6   :  { %v1480_v57 = vsel %vm956_vm4, %v1478_v55, 0.0 }
 0xaf7   :  { %1467 = vadd.xlane.f32.xlu1 %v1466_v56  ;;  %v1481_v58 = vadd.f32 %v1480_v57, %v1479_v49 }
 0xaf9   :  { %1482 = vadd.xlane.f32.xlu0 %v1481_v58 }
 0xb80   :  { %v1468_v59 = vpop.xlane.xlu1 %1467 }
 0xb81   :  { %v1469_v60 = vrot.slane %v1468_v59, 4 }
 0xb82   :  { %v1483_v61 = vpop.xlane.xlu0 %1482 }
 0xb83   :  { %v1470_v62 = vadd.f32 %v1469_v60, %v1468_v59  ;;  %v1484_v63 = vrot.slane %v1483_v61, 4 }
 0xb85   :  { %v1471_v21 = vrot.slane %v1470_v62, 2  ;;  %v1485_v0 = vadd.f32 %v1484_v63, %v1483_v61 }
 0xb87   :  { %v1486_v1 = vrot.slane %v1485_v0, 2  ;;  %v1472_v4 = vadd.f32 %v1471_v21, %v1470_v62 }
 0xb89   :  { %v1473_v3 = vrot.slane %v1472_v4, 1  ;;  %v1487_v7 = vadd.f32 %v1486_v1, %v1485_v0 }
 0xb8b   :  { %v1474_v12 = vadd.f32 %v1473_v3, %v1472_v4  ;;  %v1488_v13 = vrot.slane %v1487_v7, 1 }
 0xb8d   :  { %2147 = vpush %v1474_v12  ;;  %v1489_v14 = vadd.f32 %v1488_v13, %v1487_v7 }
 0xb8f   :  { %2149 = vpush %v1489_v14 }
 0xbbe   :  { %s2148_s19 = spop %2147 }
 0xbbf   :  { %s1476_s20 = smul.f32 0.001953125, %s2148_s19 }
 0xbc0   :  { %s2150_s21 = spop %2149 }
 0xbc1   :  { %s1492_s3 = smul.f32 %s1476_s20, %s1476_s20  ;;  %v1494_v18 = vstv %s1476_s20 }
 0xbc2   :  { %s1491_s22 = smul.f32 0.001953125, %s2150_s21  ;;  %v1495_v19 = vsub.f32 %v1458_v45, %v1494_v18  ;;  %v1496_v23 = vsub.f32 %v1461_v50, %v1494_v18 }
 0xbc4   :  { %s1493_s23 = ssub.f32 %s1491_s22, %s1492_s3 }
 0xbc6   :  { %s1497_s0 = sadd.f32 1e-05, %s1493_s23 }
 0xbc8   :  { %v1498_v15 = vstv %s1497_s0 }
 0xbc9   :  { %2239 = vrsqrt.f32 %v1498_v15 }
 0xbd6   :  { %v2240_v17 = vpop.eup %2239 }
 0xbd7   :  { %2151 = vpush %v2240_v17 }
 0xc08   :  { %s2152_s24 = spop %2151 }
 0xc09   :  { %v1501_v5 = vstv %s2152_s24  ;;  %s1968_s24 = sld [smem:[#allocation2 + $0x4]] }
 0xc0a   :  { %v1502_v2 = vmul.f32 %v1501_v5, %v1495_v19  ;;  %v1503_v9 = vmul.f32 %v1501_v5, %v1496_v23 }
 0xc0c   :  { %v1508_v10 = vmul.f32 %v1507_v25, %v1502_v2  ;;  %v1509_v26 = vmul.f32 %v1507_v25, %v1503_v9 }
 0xc0e   :  { %v1514_v29 = vadd.f32 %v1513_v27, %v1508_v10  ;;  %v1515_v20 = vadd.f32 %v1513_v27, %v1509_v26 }
 0xc10   :  { %v1516_v31 = vpack.c.bf16 %v1515_v20, %v1514_v29  ;;  %v1561_v35 = vmul.f32 %v1560_v33, %v1514_v29  ;;  %v1562_v36 = vmul.f32 %v1560_v33, %v1515_v20 }
 0xc12   :  { %2096 = vmatpush3.bf16.msra.mxu0 %v1516_v31 }
 0xc13   :  { %2101 = vmatprep.subr.bf16.mxu0 %v2274_v46 }
 0xc15   :  { %2098 = vmatmul.mubr.msk.bf16.vlgmr.msra.gmra.mxu0 %vm644_vm1, %v2488_v40  ;;  %v2207_v40 = vld [vmem:[%s2710_s7 + $0x78] sm:$0xff]  }
 0xc16   :  { %2105 = vmatprep.mubr.msk.bf16.mxu0 %vm2275_vm2, %v2274_v46  ;;  %2102 = vmatpush3.bf16.msra.mxu0 %v2205_v28 }
 0xc17   :  { %2103 = vmatprep.subr.bf16.mxu0 %v2274_v46  ;;  %2110 = vmatpush3.bf16.msra.mxu1 %v2207_v40 }
 0xc18   :  { %2111 = vmatprep.subr.bf16.mxu1 %v2274_v46 }
 0xc1a   :  { %2104 = vmatpush3.bf16.msra.mxu0 %v2206_v30 }
 0xc1b   :  { %2121 = vmatprep.subr.bf16.mxu0 %v2274_v46  ;;  %2112 = vmatpush3.bf16.msra.mxu1 %v2208_v41  ;;  %v1782_v41 = vstv %s1968_s24 }
 0xc1c   :  { %2113 = vmatprep.subr.bf16.mxu1 %v2274_v46 }
 0xc1f   :  { %2114 = vmatpush3.bf16.msra.mxu1 %v2209_v6 }
 0xc20   :  { %2115 = vmatprep.subr.bf16.mxu1 %v2274_v46 }
 0xc23   :  { %2116 = vmatpush3.bf16.msra.mxu1 %v2210_v42 }
 0xcd5   :  { %v1551_v32 = vpop.f32.mrf.mxu0 }
 0xcd6   :  { %v1563_v38 = vadd.f32 %v1561_v35, %v1551_v32 }
 0xcd7   :  { %v2099_v34 = vpop.f32.mrf.mxu0 }
 0xcd9   :  { %v1554_v37 = vpop.f32.mrf.mxu0 }
 0xcda   :  { %v1564_v39 = vadd.f32 %v1562_v36, %v1554_v37 }
 0xcdb   :  { %v2100_v16 = vpop.f32.mrf.mxu0 }
 0xcdc   :  { %v1565_v24 = vpack.c.bf16 %v1564_v39, %v1563_v38  ;;  %v1967_v38 = vld [vmem:[%s2713_s10] ss:$0 sm:$0xff] }
 0xcde   :  { %2106 = vmatmul.mubr.msk.bf16.vlgmr.msra.gmra.mxu0 %vm956_vm4, %v1565_v24 }
 0xcdf   :  { %2123 = vmatprep.mubr.msk.bf16.mxu0 %vm2275_vm2, %v2274_v46  ;;  %v1961_v46 = vld [vmem:[%s2712_s9 + $0xc] sm:$0x7] }
 0xce0   :  { %v1649_v55 = vrot.slane %v1961_v46, %v2424_v22  ;;  %v1761_v31 = vrot.slane %v1961_v46, %v2427_v8  ;;  %v1767_v32 = vrot.slane %v1961_v46, %v2547_v53 }
 0xd9e   :  { %v1625_v44 = vpop.f32.mrf.mxu0 }
 0xd9f   :  { %v1626_v47 = vadd.f32 %v1949_v43, %v1625_v44 }
 0xda0   :  { %v2107_v45 = vpop.f32.mrf.mxu0 }
 0xda1   :  { %v1632_v52 = vmax.f32 %v1626_v47, 0.0 }
 0xda2   :  { %v1628_v48 = vpop.f32.mrf.mxu0 }
 0xda3   :  { %v1629_v50 = vadd.f32 %v1949_v43, %v1628_v48 }
 0xda4   :  { %v2108_v51 = vpop.f32.mrf.mxu0 }
 0xda5   :  { %v1633_v11 = vmax.f32 %v1629_v50, 0.0 }
 0xda7   :  { %v1634_v54 = vpack.c.bf16 %v1633_v11, %v1632_v52 }
 0xda9   :  { %2118 = vmatmul.mubr.msk.bf16.vlgmr.msra.gmra.mxu1 %vm911_vm3, %v1634_v54 }
 0xe69   :  { %v1711_v56 = vpop.f32.mrf.mxu1 }
 0xe6a   :  { %v1712_v49 = vadd.f32 %v1711_v56, %v1649_v55 }
 0xe6b   :  { %v2119_v57 = vpop.f32.mrf.mxu1 }
 0xe6c   :  { %v1731_v60 = vmul.f32 %v1712_v49, %v1712_v49  ;;  %v1718_v62 = vsel %vm956_vm4, %v1712_v49, 0.0 }
 0xe6d   :  { %v1714_v58 = vpop.f32.mrf.mxu1 }
 0xe6e   :  { %v1715_v59 = vadd.f32 %v1714_v58, %v1649_v55  ;;  %v1733_v1 = vsel %vm956_vm4, %v1731_v60, 0.0 }
 0xe6f   :  { %v2120_v61 = vpop.f32.mrf.mxu1 }
 0xe70   :  { %v1719_v63 = vsel %vm956_vm4, %v1715_v59, 0.0  ;;  %v1732_v21 = vmul.f32 %v1715_v59, %v1715_v59 }
 0xe71   :  { %v1720_v0 = vadd.f32 %v1719_v63, %v1718_v62 }
 0xe72   :  { %v1734_v4 = vsel %vm956_vm4, %v1732_v21, 0.0 }
 0xe73   :  { %1721 = vadd.xlane.f32.xlu1 %v1720_v0  ;;  %v1735_v3 = vadd.f32 %v1734_v4, %v1733_v1 }
 0xe75   :  { %1736 = vadd.xlane.f32.xlu0 %v1735_v3 }
 0xefc   :  { %v1722_v22 = vpop.xlane.xlu1 %1721 }
 0xefd   :  { %v1723_v7 = vrot.slane %v1722_v22, 4 }
 0xefe   :  { %v1737_v12 = vpop.xlane.xlu0 %1736 }
 0xeff   :  { %v1724_v13 = vadd.f32 %v1723_v7, %v1722_v22  ;;  %v1738_v14 = vrot.slane %v1737_v12, 4 }
 0xf01   :  { %v1725_v15 = vrot.slane %v1724_v13, 2  ;;  %v1739_v17 = vadd.f32 %v1738_v14, %v1737_v12 }
 0xf03   :  { %v1726_v18 = vadd.f32 %v1725_v15, %v1724_v13  ;;  %v1740_v19 = vrot.slane %v1739_v17, 2 }
 0xf05   :  { %v1741_v23 = vadd.f32 %v1740_v19, %v1739_v17  ;;  %v1727_v25 = vrot.slane %v1726_v18, 1 }
 0xf07   :  { %v1728_v5 = vadd.f32 %v1727_v25, %v1726_v18  ;;  %v1742_v27 = vrot.slane %v1741_v23, 1 }
 0xf09   :  { %2153 = vpush %v1728_v5  ;;  %v1743_v2 = vadd.f32 %v1742_v27, %v1741_v23 }
 0xf0b   :  { %2155 = vpush %v1743_v2 }
 0xf3a   :  { %s2154_s7 = spop %2153 }
 0xf3b   :  { %s1730_s8 = smul.f32 0.001953125, %s2154_s7 }
 0xf3c   :  { %s2156_s9 = spop %2155 }
 0xf3d   :  { %s1746_s19 = smul.f32 %s1730_s8, %s1730_s8  ;;  %v1748_v26 = vstv %s1730_s8 }
 0xf3e   :  { %s1745_s20 = smul.f32 0.001953125, %s2156_s9  ;;  %v1749_v29 = vsub.f32 %v1712_v49, %v1748_v26  ;;  %v1750_v20 = vsub.f32 %v1715_v59, %v1748_v26 }
 0xf40   :  { %s1747_s21 = ssub.f32 %s1745_s20, %s1746_s19 }
 0xf42   :  { %s1751_s3 = sadd.f32 1e-05, %s1747_s21 }
 0xf44   :  { %v1752_v9 = vstv %s1751_s3 }
 0xf45   :  { %2241 = vrsqrt.f32 %v1752_v9 }
 0xf52   :  { %v2242_v10 = vpop.eup %2241 }
 0xf53   :  { %2157 = vpush %v2242_v10 }
 0xf84   :  { %s2158_s22 = spop %2157 }
 0xf85   :  { %v1755_v28 = vstv %s2158_s22 }
 0xf86   :  { %v1756_v30 = vmul.f32 %v1755_v28, %v1749_v29  ;;  %v1757_v40 = vmul.f32 %v1755_v28, %v1750_v20 }
 0xf88   :  { %v1762_v33 = vmul.f32 %v1761_v31, %v1756_v30  ;;  %v1763_v34 = vmul.f32 %v1761_v31, %v1757_v40 }
 0xf8a   :  { %v1768_v35 = vadd.f32 %v1767_v32, %v1762_v33  ;;  %v1769_v36 = vadd.f32 %v1767_v32, %v1763_v34 }
 0xf8c   :  { %v1780_v37 = vpack.c.bf16 %v1769_v36, %v1768_v35  ;;  %v1777_v16 = vmul.f32 %v1967_v38, %v1768_v35  ;;  %v1778_v24 = vmul.f32 %v1967_v38, %v1769_v36 }
 0xf8e   :  { %v1787_v39 = vsel %vm956_vm4, %v1780_v37, 0  ;;  %v1779_v8 = vpack.c.bf16 %v1778_v24, %v1777_v16 }
 0xf8f   :  { %2122 = vmatpush3.bf16.xpose.msra.mxu0 %v1787_v39 }
 0xf96   :  { %2124 = vmatmul.mubr.msk.bf16.vlgmr.msra.gmra.mxu0 %vm956_vm4, %v1779_v8 }
0x1056   :  { %v1826_v53 = vpop.f32.mrf.mxu0 }
0x1057   :  { %v1827_v6 = vadd.f32 %v1826_v53, %v1782_v41 }
0x1058   :  { %v2125_v42 = vpop.f32.mrf.mxu0 }
0x1059   :  { %v1970_v43 = vmul.f32 -1.442695, %v1827_v6 }
0x105a   :  { %v1829_v44 = vpop.f32.mrf.mxu0 }
0x105b   :  { %2243 = vpow2.f32 %v1970_v43  ;;  %v1830_v45 = vadd.f32 %v1829_v44, %v1782_v41 }
0x105c   :  { %v2126_v47 = vpop.f32.mrf.mxu0 }
0x105d   :  { %v1971_v48 = vmul.f32 -1.442695, %v1830_v45 }
0x105f   :  { %2245 = vpow2.f32 %v1971_v48 }
0x1068   :  { %v2244_v50 = vpop.eup %2243 }
0x1069   :  { %v1839_v51 = vadd.f32 1.0, %v2244_v50 }
0x106b   :  { %2247 = vrcp.f32 %v1839_v51 }
0x106c   :  { %v2246_v52 = vpop.eup %2245 }
0x106d   :  { %v1840_v11 = vadd.f32 1.0, %v2246_v52 }
0x106f   :  { %2249 = vrcp.f32 %v1840_v11 }
0x1078   :  { %v2248_v54 = vpop.eup %2247 }
0x1079   :  { %1845 = vst [vmem:[%s2714_s11] sm:$0xff] %v2248_v54 }
0x107c   :  { %v2250_v46 = vpop.eup %2249 }
0x107d   :  { %1846 = vst [vmem:[%s2714_s11 + $0x8] sm:$0xff] %v2250_v46 }
0x107e   :  { %1851 = vsyncpa [#allocation3], 1 }

</bundles_post_ra>
